<compile_context>
chip_gen: v7x
topology: tpu7x:2x2x1
jax: 0.10.0
libtpu: 0.0.40
codegen_flags: <defaults>
</compile_context>

<pallas_src>
import jax
import jax.numpy as jnp
from jax.experimental import pallas as pl
from jax.experimental.pallas import tpu as pltpu

_LANE = 128
_FAST_PATH_VMEM_BYTES = 8 * 1024 * 1024


def _round_up(x, m):
    return -(-x // m) * m


def _plan(n):
    """Padded node count + (row tile tm, reduction tile tk) for the A stream."""
    n128 = _round_up(max(n, 1), _LANE)
    # Largest reduction tile whose zero-padding overhead stays modest (<= ~12.5%).
    tk = _LANE
    for cand in (512, 256):
        if _round_up(n128, cand) - n128 <= n128 // 8:
            tk = cand
            break
    n_pad = _round_up(n128, tk)
    tm = min(256, tk)
    # Keep >= 2 row tiles when possible so the 'parallel' row axis can shard
    # across both TensorCores on v7x.
    tm = min(tm, max(_LANE, n_pad // 2))
    return n_pad, tm, tk


def _pad2(a, rows, cols, dtype=None):
    if dtype is not None and a.dtype != dtype:
        a = a.astype(dtype)
    r, c = a.shape
    if (r, c) != (rows, cols):
        a = jnp.pad(a, ((0, rows - r), (0, cols - c)))
    return a


def preprocess_adjacency(adj_hat):
    """Pad + cast the dense normalized adjacency to bf16 ONCE; reuse per call."""
    n_pad, _, _ = _plan(adj_hat.shape[0])
    return _pad2(adj_hat, n_pad, n_pad, jnp.bfloat16)


def _fast_path_bytes(n_pad, d_pad):
    a = n_pad * n_pad * 2                 # A (bf16), resident
    feats = 6 * n_pad * d_pad * 4         # x(f32) + out(f32) + f32 temporaries
    w = 2 * d_pad * d_pad * 2 + 2 * d_pad * 4
    return a + feats + w


def _vmem_limit(tm, tk, d_pad):
    a = 2 * tm * tk * 2                   # A tile, double-buffered
    feat = 2 * tk * d_pad * 2             # streamed feature tile
    w = 2 * d_pad * d_pad * 2             # W1 + W2 resident
    out = 2 * tm * d_pad * 4
    skip = 2 * tm * d_pad * 4
    acc = tm * d_pad * 4
    est = a + feat + w + out + skip + acc
    return int(min(max(2 * est, 32 * 1024 * 1024), 48 * 1024 * 1024))


# --------------------------------------------------------------------------
# Kernel 1:  HW2 = relu( A @ (X @ W1) + b1 ) @ W2
#   A streamed (tm, tk); X streamed (tk, d_pad); W1/W2/b1 resident.
#   X@W1 recomputed per k step (cheap vs. A DMA); H@W2 fused into finalize.
# --------------------------------------------------------------------------
def _layer1_kernel(a_ref, x_ref, w1_ref, b1_ref, w2_ref, o_ref, acc_ref):
    k = pl.program_id(1)

    @pl.when(k == 0)
    def _():
        acc_ref[...] = jnp.zeros_like(acc_ref)

    xw_k = jnp.dot(
        x_ref[...], w1_ref[...], preferred_element_type=jnp.float32
    ).astype(jnp.bfloat16)
    acc_ref[...] += jnp.dot(a_ref[...], xw_k, preferred_element_type=jnp.float32)

    @pl.when(k == pl.num_programs(1) - 1)
    def _():
        h = jnp.maximum(acc_ref[...] + b1_ref[...], 0.0).astype(jnp.bfloat16)
        o_ref[...] = jnp.dot(
            h, w2_ref[...], preferred_element_type=jnp.float32
        ).astype(o_ref.dtype)


def _layer1_call(a_bf, x_bf, w1_bf, b1_f, w2_bf, *, tm, tk, vmem_limit):
    n_pad = a_bf.shape[0]
    d_pad = x_bf.shape[1]
    return pl.pallas_call(
        _layer1_kernel,
        out_shape=jax.ShapeDtypeStruct((n_pad, d_pad), jnp.bfloat16),
        grid_spec=pltpu.PrefetchScalarGridSpec(
            num_scalar_prefetch=0,
            grid=(n_pad // tm, n_pad // tk),
            in_specs=[
                pl.BlockSpec((tm, tk), lambda i, k: (i, k)),        # A streamed
                pl.BlockSpec((tk, d_pad), lambda i, k: (k, 0)),     # X streamed
                pl.BlockSpec((d_pad, d_pad), lambda i, k: (0, 0)),  # W1 resident
                pl.BlockSpec((1, d_pad), lambda i, k: (0, 0)),      # b1 resident
                pl.BlockSpec((d_pad, d_pad), lambda i, k: (0, 0)),  # W2 resident
            ],
            out_specs=pl.BlockSpec((tm, d_pad), lambda i, k: (i, 0)),
            scratch_shapes=[pltpu.VMEM((tm, d_pad), jnp.float32)],
        ),
        compiler_params=pltpu.CompilerParams(
            dimension_semantics=("parallel", "arbitrary"),
            vmem_limit_bytes=vmem_limit,
        ),
    )(a_bf, x_bf, w1_bf, b1_f, w2_bf)


# --------------------------------------------------------------------------
# Kernel 2:  Y = relu( X + A @ HW2 + b2 )
#   A streamed (tm, tk); HW2 streamed (tk, d_pad) (never fully resident).
# --------------------------------------------------------------------------
def _layer2_kernel(a_ref, hw2_ref, b2_ref, skip_ref, o_ref, acc_ref):
    k = pl.program_id(1)

    @pl.when(k == 0)
    def _():
        acc_ref[...] = jnp.zeros_like(acc_ref)

    acc_ref[...] += jnp.dot(
        a_ref[...], hw2_ref[...], preferred_element_type=jnp.float32
    )

    @pl.when(k == pl.num_programs(1) - 1)
    def _():
        y = acc_ref[...] + b2_ref[...] + skip_ref[...].astype(jnp.float32)
        o_ref[...] = jnp.maximum(y, 0.0).astype(o_ref.dtype)


def _layer2_call(a_bf, hw2_bf, b2_f, skip_f32, out_dtype, *, tm, tk, vmem_limit):
    n_pad = a_bf.shape[0]
    d_pad = hw2_bf.shape[1]
    return pl.pallas_call(
        _layer2_kernel,
        out_shape=jax.ShapeDtypeStruct((n_pad, d_pad), out_dtype),
        grid_spec=pltpu.PrefetchScalarGridSpec(
            num_scalar_prefetch=0,
            grid=(n_pad // tm, n_pad // tk),
            in_specs=[
                pl.BlockSpec((tm, tk), lambda i, k: (i, k)),      # A streamed
                pl.BlockSpec((tk, d_pad), lambda i, k: (k, 0)),   # HW2 streamed
                pl.BlockSpec((1, d_pad), lambda i, k: (0, 0)),    # b2 resident
                pl.BlockSpec((tm, d_pad), lambda i, k: (i, 0)),   # skip (f32)
            ],
            out_specs=pl.BlockSpec((tm, d_pad), lambda i, k: (i, 0)),
            scratch_shapes=[pltpu.VMEM((tm, d_pad), jnp.float32)],
        ),
        compiler_params=pltpu.CompilerParams(
            dimension_semantics=("parallel", "arbitrary"),
            vmem_limit_bytes=vmem_limit,
        ),
    )(a_bf, hw2_bf, b2_f, skip_f32)


# --------------------------------------------------------------------------
# Small-graph fast path: single fused kernel, everything VMEM-resident.
# --------------------------------------------------------------------------
def _fused_small_kernel(a_ref, x_ref, w1_ref, b1_ref, w2_ref, b2_ref, o_ref):
    a = a_ref[...]                                     # bf16
    x_f32 = x_ref[...]                                 # f32 (skip path)
    xw1 = jnp.dot(
        x_f32.astype(jnp.bfloat16), w1_ref[...], preferred_element_type=jnp.float32
    ).astype(jnp.bfloat16)
    h = jnp.maximum(
        jnp.dot(a, xw1, preferred_element_type=jnp.float32) + b1_ref[...], 0.0
    )
    hw2 = jnp.dot(
        h.astype(jnp.bfloat16), w2_ref[...], preferred_element_type=jnp.float32
    ).astype(jnp.bfloat16)
    y = jnp.dot(a, hw2, preferred_element_type=jnp.float32) + b2_ref[...] + x_f32
    o_ref[...] = jnp.maximum(y, 0.0).astype(o_ref.dtype)


def _fused_small_call(a_bf, x_f32, w1_bf, b1_f, w2_bf, b2_f, out_dtype):
    n_pad, d_pad = x_f32.shape
    vmem = pl.BlockSpec(memory_space=pltpu.MemorySpace.VMEM)
    return pl.pallas_call(
        _fused_small_kernel,
        out_shape=jax.ShapeDtypeStruct((n_pad, d_pad), out_dtype),
        in_specs=[vmem] * 6,
        out_specs=vmem,
    )(a_bf, x_f32, w1_bf, b1_f, w2_bf, b2_f)


# --------------------------------------------------------------------------
# Full GNNSkipBlock forward
# --------------------------------------------------------------------------
def gnn_skip_block(adj_hat, x, w1, b1, w2, b2, *, force_tiled=False):
    """y = relu(x + A @ (relu(A @ (x @ W1) + b1) @ W2) + b2).

    adj_hat: (N, N) normalized adjacency (f32), or the padded bf16 copy from
             preprocess_adjacency (hoists the N^2 pad+cast off this path).
    x: (N, D); w1, w2: (D, D); b1, b2: (1, D) or (D,).
    """
    n, d = x.shape
    d_pad = _round_up(d, _LANE)
    n_pad, tm, tk = _plan(n)

    if adj_hat.shape == (n_pad, n_pad) and adj_hat.dtype == jnp.bfloat16:
        a_bf = adj_hat                      # already preprocessed
    else:
        a_bf = preprocess_adjacency(adj_hat)

    x_f32 = _pad2(x, n_pad, d_pad, jnp.float32)
    w1_bf = _pad2(w1, d_pad, d_pad, jnp.bfloat16)
    w2_bf = _pad2(w2, d_pad, d_pad, jnp.bfloat16)
    b1_f = _pad2(jnp.reshape(b1, (1, -1)), 1, d_pad, jnp.float32)
    b2_f = _pad2(jnp.reshape(b2, (1, -1)), 1, d_pad, jnp.float32)

    use_fast = (not force_tiled) and (
        _fast_path_bytes(n_pad, d_pad) <= _FAST_PATH_VMEM_BYTES
    )
    if use_fast:
        y = _fused_small_call(a_bf, x_f32, w1_bf, b1_f, w2_bf, b2_f, x.dtype)
    else:
        vmem_limit = _vmem_limit(tm, tk, d_pad)
        x_bf = x_f32.astype(jnp.bfloat16)
        # Layer 1 (+ fused H @ W2):  HW2 is the only HBM intermediate.
        hw2 = _layer1_call(a_bf, x_bf, w1_bf, b1_f, w2_bf,
                           tm=tm, tk=tk, vmem_limit=vmem_limit)
        # Layer 2 + skipsum + block ReLU.
        y = _layer2_call(a_bf, hw2, b2_f, x_f32, x.dtype,
                         tm=tm, tk=tk, vmem_limit=vmem_limit)
    return y[:n, :d]


def _reference(adj_hat, x, w1, b1, w2, b2):
    h = jnp.maximum(adj_hat @ (x @ w1) + b1, 0.0)
    return jnp.maximum(x + adj_hat @ (h @ w2) + b2, 0.0)


if __name__ == "__main__":
    def build_inputs(key, n, d):
        k_x, k_e, k_w1, k_b1, k_w2, k_b2 = jax.random.split(key, 6)
        x = jax.random.normal(k_x, (n, d), dtype=jnp.float32)
        edge_logits = jax.random.uniform(k_e, (n, n))
        adj = (edge_logits + edge_logits.T > 1.6).astype(jnp.float32)
        adj = adj * (1.0 - jnp.eye(n)) + jnp.eye(n)
        d_inv_sqrt = 1.0 / jnp.sqrt(jnp.sum(adj, axis=1))
        adj_hat = (adj * d_inv_sqrt[:, None] * d_inv_sqrt[None, :]).astype(jnp.float32)
        scale = 1.0 / jnp.sqrt(jnp.float32(d))
        w1 = jax.random.normal(k_w1, (d, d), dtype=jnp.float32) * scale
        b1 = jax.random.normal(k_b1, (1, d), dtype=jnp.float32) * 0.01
        w2 = jax.random.normal(k_w2, (d, d), dtype=jnp.float32) * scale
        b2 = jax.random.normal(k_b2, (1, d), dtype=jnp.float32) * 0.01
        return adj_hat, x, w1, b1, w2, b2

    key = jax.random.PRNGKey(0)
    k1, k2 = jax.random.split(key)

    # Case 1: small graph, dims aligned -> single fused VMEM-resident kernel.
    # Adjacency pad+cast hoisted out of the forward call (reusable copy).
    args = build_inputs(k1, 256, 32)
    adj_pre = preprocess_adjacency(args[0])
    out = jax.block_until_ready(gnn_skip_block(adj_pre, *args[1:]))
    ref = _reference(*args)
    assert out.shape == ref.shape
    err = float(jnp.max(jnp.abs(out - ref)))
    assert jnp.allclose(out, ref, atol=5e-2, rtol=5e-2), f"fast path max err {err}"

    # Case 2: non-aligned N, force the tiled/streamed two-kernel path
    # (exercises pl.when init/finalize over the reduction axis and padding).
    args = build_inputs(k2, 300, 32)
    out = jax.block_until_ready(gnn_skip_block(*args, force_tiled=True))
    ref = _reference(*args)
    assert out.shape == ref.shape
    err = float(jnp.max(jnp.abs(out - ref)))
    assert jnp.allclose(out, ref, atol=5e-2, rtol=5e-2), f"tiled path max err {err}"

    print("KERNEL_OK")
</pallas_src>

<mosaic_0001>
module attributes {stable_mosaic.version = 11 : i64} {
  func.func @_fused_small_kernel(%arg0: memref<256x256xbf16, #tpu.memory_space<vmem>>, %arg1: memref<256x128xf32, #tpu.memory_space<vmem>>, %arg2: memref<128x128xbf16, #tpu.memory_space<vmem>>, %arg3: memref<1x128xf32, #tpu.memory_space<vmem>>, %arg4: memref<128x128xbf16, #tpu.memory_space<vmem>>, %arg5: memref<1x128xf32, #tpu.memory_space<vmem>>, %arg6: memref<256x128xf32, #tpu.memory_space<vmem>>) attributes {dimension_semantics = [], scalar_prefetch = 0 : i64, scratch_operands = 0 : i64, tpu.core_type = #tpu.core_type<tc>} {
    %c0 = arith.constant 0 : index
    %c0_0 = arith.constant 0 : index
    %0 = vector.load %arg0[%c0, %c0_0] : memref<256x256xbf16, #tpu.memory_space<vmem>>, vector<256x256xbf16>
    %c0_1 = arith.constant 0 : index
    %c0_2 = arith.constant 0 : index
    %1 = vector.load %arg1[%c0_1, %c0_2] : memref<256x128xf32, #tpu.memory_space<vmem>>, vector<256x128xf32>
    %2 = arith.truncf %1 : vector<256x128xf32> to vector<256x128xbf16>
    %c0_3 = arith.constant 0 : index
    %c0_4 = arith.constant 0 : index
    %3 = vector.load %arg2[%c0_3, %c0_4] : memref<128x128xbf16, #tpu.memory_space<vmem>>, vector<128x128xbf16>
    %cst = arith.constant dense<0.000000e+00> : vector<256x128xf32>
    %4 = tpu.matmul %2, %3, %cst {dimension_numbers = #tpu.dot_dimension_numbers<[1], [0], [0], [1], [0, 0, 1, 1], [], []>} : vector<256x128xbf16>, vector<128x128xbf16>, vector<256x128xf32> -> vector<256x128xf32>
    %5 = arith.truncf %4 : vector<256x128xf32> to vector<256x128xbf16>
    %cst_5 = arith.constant dense<0.000000e+00> : vector<256x128xf32>
    %6 = tpu.matmul %0, %5, %cst_5 {dimension_numbers = #tpu.dot_dimension_numbers<[1], [0], [0], [1], [0, 0, 1, 1], [], []>} : vector<256x256xbf16>, vector<256x128xbf16>, vector<256x128xf32> -> vector<256x128xf32>
    %c0_6 = arith.constant 0 : index
    %c0_7 = arith.constant 0 : index
    %7 = vector.load %arg3[%c0_6, %c0_7] : memref<1x128xf32, #tpu.memory_space<vmem>>, vector<1x128xf32>
    %8 = vector.broadcast %7 : vector<1x128xf32> to vector<256x128xf32>
    %9 = arith.addf %6, %8 : vector<256x128xf32>
    %cst_8 = arith.constant 0.000000e+00 : f32
    %10 = vector.broadcast %cst_8 : f32 to vector<256x128xf32>
    %11 = arith.maximumf %9, %10 : vector<256x128xf32>
    %12 = arith.truncf %11 : vector<256x128xf32> to vector<256x128xbf16>
    %c0_9 = arith.constant 0 : index
    %c0_10 = arith.constant 0 : index
    %13 = vector.load %arg4[%c0_9, %c0_10] : memref<128x128xbf16, #tpu.memory_space<vmem>>, vector<128x128xbf16>
    %cst_11 = arith.constant dense<0.000000e+00> : vector<256x128xf32>
    %14 = tpu.matmul %12, %13, %cst_11 {dimension_numbers = #tpu.dot_dimension_numbers<[1], [0], [0], [1], [0, 0, 1, 1], [], []>} : vector<256x128xbf16>, vector<128x128xbf16>, vector<256x128xf32> -> vector<256x128xf32>
    %15 = arith.truncf %14 : vector<256x128xf32> to vector<256x128xbf16>
    %cst_12 = arith.constant dense<0.000000e+00> : vector<256x128xf32>
    %16 = tpu.matmul %0, %15, %cst_12 {dimension_numbers = #tpu.dot_dimension_numbers<[1], [0], [0], [1], [0, 0, 1, 1], [], []>} : vector<256x256xbf16>, vector<256x128xbf16>, vector<256x128xf32> -> vector<256x128xf32>
    %c0_13 = arith.constant 0 : index
    %c0_14 = arith.constant 0 : index
    %17 = vector.load %arg5[%c0_13, %c0_14] : memref<1x128xf32, #tpu.memory_space<vmem>>, vector<1x128xf32>
    %18 = vector.broadcast %17 : vector<1x128xf32> to vector<256x128xf32>
    %19 = arith.addf %16, %18 : vector<256x128xf32>
    %20 = arith.addf %19, %1 : vector<256x128xf32>
    %cst_15 = arith.constant 0.000000e+00 : f32
    %21 = vector.broadcast %cst_15 : f32 to vector<256x128xf32>
    %22 = arith.maximumf %20, %21 : vector<256x128xf32>
    %c0_16 = arith.constant 0 : index
    %c0_17 = arith.constant 0 : index
    %23 = vector.load %arg6[%c0_16, %c0_17] : memref<256x128xf32, #tpu.memory_space<vmem>>, vector<256x128xf32>
    tpu.vector_store %arg6[%c0_16, %c0_17], %22 {strides = array<i32>} : memref<256x128xf32, #tpu.memory_space<vmem>>, vector<256x128xf32>,
    return
  }
}

</mosaic_0001>

<bundles_post_ra>
// kernel: tpu_custom_call.1
= control target key start
LH: loop header
LB: loop body
LE: loop exit
PB: predicated region body
PF: predicated region fallthrough
CT: control target
= control target key end

     0   :  { %11 = vsyncpa [#allocation3], 0  ;;  %s2264_s0 = inlined_call_operand.hbm [shape: bf16[256,256], index: 0, kind: input, shape index: {}]   ;;  %s2265_s1 = inlined_call_operand.hbm [shape: f32[256,128], index: 1, kind: input, shape index: {}]   ;;  %s2266_s2 = inlined_call_operand.hbm [shape: bf16[128,128], index: 2, kind: input, shape index: {}]   ;;  %s2267_s3 = inlined_call_operand.vmem [shape: f32[1,128], index: 3, kind: input, shape index: {}]   ;;  %s2268_s4 = inlined_call_operand.hbm [shape: bf16[128,128], index: 4, kind: input, shape index: {}]   ;;  %s2269_s5 = inlined_call_operand.vmem [shape: f32[1,128], index: 5, kind: input, shape index: {}]   ;;  %s2270_s6 = inlined_call_operand.hbm [shape: f32[256,128], index: 6, kind: output, shape index: {}]  }
   0x1   :  { %12 = vsyncpa [#allocation6], 0 }
   0x2   :  { %13 = vsyncpa [#allocation9], 0 }
   0x3   :  { %14 = vsyncpa [#allocation4], 0  ;;  %s1942_s21 = smov [#allocation5]   ;;  %s1943_s23 = smov [#allocation2]  }
   0x4   :  { %s32_s22 = sshll.u32 %s1942_s21, 4  ;;  %s20_s24 = sshll.u32 %s1943_s23, 4  ;;  %s33_s22 = int_to_ptr.vmem [resolvable:$true] %s32_s22  ;;  %s1986_s24 = int_to_ptr.vmem [resolvable:$true] %s20_s24 }
   0x5   :  { %s1824_s27 = scalar_lea.hbm %s2265_s1, 4096 }
   0x6   :  { %p1825_p0 = scmp.ne.s32.totalorder %s2265_s1, %s1824_s27  ;;  %p1828_p1 = scmp.lt.u32.totalorder %s1824_s27, %s2265_s1 }
   0x8   :  { %p1830_p2 = pnand %p1828_p1, %p1825_p0 }
   0xa   :  { %1833 = shalt.err (!%p1830_p2)
}
   0xb   :  { %s1834_s8 = scalar_lea.vmem %s33_s22, 4096  ;;  %p1839_p4 = scmp.lt.s32.totalorder %s33_s22, %s33_s22 }
   0xc   :  { %p1835_p3 = scmp.ne.s32.totalorder %s33_s22, %s1834_s8  ;;  %p1840_p5 = scmp.lt.s32.totalorder %s1834_s8, %s1834_s8 }
   0xe   :  { %p1841_p6 = por %p1840_p5, %p1839_p4 }
  0x10   :  { %p1842_p7 = pnand %p1841_p6, %p1835_p3 }
  0x12   :  { %1845 = shalt.err (!%p1842_p7)
}
  0x13   :  { %s1944_s9 = smov 128   ;;  %s1945_s10 = smov 8  }
  0x14   :  { %38 = dma.hbm_to_vmem [thread:$0]  %s2265_s1, 4096, %s33_s22, [#allocation6], %s1944_s9, %s1944_s9, %s1945_s10  }
  0x15   :  { %s1846_s15 = scalar_lea.hbm %s2264_s0, 4096 }
  0x16   :  { %p1847_p8 = scmp.ne.s32.totalorder %s2264_s0, %s1846_s15  ;;  %p1850_p9 = scmp.lt.u32.totalorder %s1846_s15, %s2264_s0 }
  0x18   :  { %p1852_p10 = pnand %p1850_p9, %p1847_p8 }
  0x1a   :  { %1855 = shalt.err (!%p1852_p10)
}
  0x1b   :  { %s1856_s20 = scalar_lea.vmem %s1986_s24, 4096  ;;  %p1861_p12 = scmp.lt.s32.totalorder %s1986_s24, %s1986_s24 }
  0x1c   :  { %p1857_p11 = scmp.ne.s32.totalorder %s1986_s24, %s1856_s20  ;;  %p1862_p13 = scmp.lt.s32.totalorder %s1856_s20, %s1856_s20 }
  0x1e   :  { %p1863_p0 = por %p1862_p13, %p1861_p12 }
  0x20   :  { %p1864_p1 = pnand %p1863_p0, %p1857_p11 }
  0x22   :  { %1867 = shalt.err (!%p1864_p1)
}
  0x23   :  { %26 = dma.hbm_to_vmem [thread:$0]  %s2264_s0, 4096, %s1986_s24, [#allocation3], %s1944_s9, %s1944_s9, %s1945_s10  }
  0x24   :  { %s1946_s22 = smov [#allocation7]   ;;  %s1868_s27 = scalar_lea.hbm %s2266_s2, 1024 }
  0x25   :  { %s44_s23 = sshll.u32 %s1946_s22, 4  ;;  %p1869_p2 = scmp.ne.s32.totalorder %s2266_s2, %s1868_s27  ;;  %s45_s23 = int_to_ptr.vmem [resolvable:$true] %s44_s23 }
  0x26   :  { %p1872_p3 = scmp.lt.u32.totalorder %s1868_s27, %s2266_s2 }
  0x28   :  { %p1874_p4 = pnand %p1872_p3, %p1869_p2 }
  0x2a   :  { %1877 = shalt.err (!%p1874_p4)
}
  0x2b   :  { %s1878_s8 = scalar_lea.vmem %s45_s23, 1024  ;;  %p1883_p6 = scmp.lt.s32.totalorder %s45_s23, %s45_s23 }
  0x2c   :  { %p1879_p5 = scmp.ne.s32.totalorder %s45_s23, %s1878_s8  ;;  %p1884_p7 = scmp.lt.s32.totalorder %s1878_s8, %s1878_s8 }
  0x2e   :  { %p1885_p8 = por %p1884_p7, %p1883_p6 }
  0x30   :  { %p1886_p9 = pnand %p1885_p8, %p1879_p5 }
  0x32   :  { %1889 = shalt.err (!%p1886_p9)
}
  0x33   :  { %s1947_s0 = smov 64   ;;  %s1948_s24 = smov 4  }
  0x34   :  { %50 = dma.hbm_to_vmem [thread:$0]  %s2266_s2, 1024, %s45_s23, [#allocation6], %s1947_s0, %s1947_s0, %s1948_s24  }
  0x35   :  { %s1949_s13 = smov [#allocation8]   ;;  %s1890_s17 = scalar_lea.hbm %s2268_s4, 1024 }
  0x36   :  { %s58_s14 = sshll.u32 %s1949_s13, 4  ;;  %p1891_p10 = scmp.ne.s32.totalorder %s2268_s4, %s1890_s17  ;;  %s59_s14 = int_to_ptr.vmem [resolvable:$true] %s58_s14 }
  0x37   :  { %p1894_p11 = scmp.lt.u32.totalorder %s1890_s17, %s2268_s4 }
  0x39   :  { %p1896_p12 = pnand %p1894_p11, %p1891_p10 }
  0x3b   :  { %1899 = shalt.err (!%p1896_p12)
}
  0x3c   :  { %s1900_s21 = scalar_lea.vmem %s59_s14, 1024  ;;  %p1905_p0 = scmp.lt.s32.totalorder %s59_s14, %s59_s14 }
  0x3d   :  { %p1901_p13 = scmp.ne.s32.totalorder %s59_s14, %s1900_s21  ;;  %p1906_p1 = scmp.lt.s32.totalorder %s1900_s21, %s1900_s21 }
  0x3f   :  { %p1907_p2 = por %p1906_p1, %p1905_p0 }
  0x41   :  { %p1908_p3 = pnand %p1907_p2, %p1901_p13 }
  0x43   :  { %1911 = shalt.err (!%p1908_p3)
}
  0x44   :  { %64 = dma.hbm_to_vmem [thread:$0]  %s2268_s4, 1024, %s59_s14, [#allocation9], %s1947_s0, %s1947_s0, %s1948_s24  }
  0x45   :  { %1934 = dma.done.wait [#allocation3], 4096  }
  0x46   :  { %1935 = vsyncadd [#allocation3], 4294963200 }
  0x47   :  { %1936 = dma.done.wait [#allocation6], 5120  }
  0x48   :  { %1937 = vsyncadd [#allocation6], 4294962176 }
  0x49   :  { %1938 = dma.done.wait [#allocation9], 1024  }
  0x4a   :  { %1939 = vsyncadd [#allocation9], 4294966272  ;;  %v1728_v0 = vld [vmem:[#allocation7] sm:$0xff]   ;;  %v1729_v1 = vld [vmem:[#allocation7 + $0x8] sm:$0xff]  }
  0x4b   :  { %1623 = vmatprep.subr.bf16.mxu1 %v1728_v0  ;;  %v1730_v2 = vld [vmem:[#allocation7 + $0x10] sm:$0xff]   ;;  %v1731_v3 = vld [vmem:[#allocation7 + $0x18] sm:$0xff]   ;;  %v112_v4 = vld [vmem:[#allocation5] sm:$0xff] }
  0x4c   :  { %1624 = vmatpush3.bf16.msra.mxu1 %v1728_v0  ;;  %v113_v5 = vld [vmem:[#allocation5 + $0x8] sm:$0xff]  ;;  %v1732_v7 = vld [vmem:[#allocation7 + $0x20] sm:$0xff]   ;;  %v1734_v9 = vld [vmem:[#allocation7 + $0x30] sm:$0xff]  }
  0x4d   :  { %1625 = vmatprep.subr.bf16.mxu1 %v1729_v1  ;;  %v144_v6 = vpack.c.bf16 %v113_v5, %v112_v4  ;;  %v1733_v8 = vld [vmem:[#allocation7 + $0x28] sm:$0xff]   ;;  %v1735_v10 = vld [vmem:[#allocation7 + $0x38] sm:$0xff]   ;;  %v114_v11 = vld [vmem:[#allocation5 + $0x10] sm:$0xff] }
  0x4e   :  { %v115_v12 = vld [vmem:[#allocation5 + $0x18] sm:$0xff]  ;;  %v116_v13 = vld [vmem:[#allocation5 + $0x20] sm:$0xff]  ;;  %v117_v14 = vld [vmem:[#allocation5 + $0x28] sm:$0xff] }
  0x4f   :  { %1639 = vmatprep.mubr.bf16.mxu1 %v144_v6  ;;  %v145_v15 = vpack.c.bf16 %v115_v12, %v114_v11  ;;  %v146_v16 = vpack.c.bf16 %v117_v14, %v116_v13  ;;  %v118_v17 = vld [vmem:[#allocation5 + $0x30] sm:$0xff]  ;;  %v119_v18 = vld [vmem:[#allocation5 + $0x38] sm:$0xff]  ;;  %v120_v19 = vld [vmem:[#allocation5 + $0x40] sm:$0xff] }
  0x50   :  { %1626 = vmatpush3.bf16.msra.mxu1 %v1729_v1  ;;  %v121_v20 = vld [vmem:[#allocation5 + $0x48] sm:$0xff]  ;;  %v147_v21 = vpack.c.bf16 %v119_v18, %v118_v17  ;;  %v122_v23 = vld [vmem:[#allocation5 + $0x50] sm:$0xff]  ;;  %v123_v24 = vld [vmem:[#allocation5 + $0x58] sm:$0xff] }
  0x51   :  { %1627 = vmatprep.subr.bf16.mxu1 %v1730_v2  ;;  %v148_v22 = vpack.c.bf16 %v121_v20, %v120_v19  ;;  %v124_v25 = vld [vmem:[#allocation5 + $0x60] sm:$0xff]  ;;  %v125_v26 = vld [vmem:[#allocation5 + $0x68] sm:$0xff]  ;;  %v149_v27 = vpack.c.bf16 %v123_v24, %v122_v23  ;;  %v126_v29 = vld [vmem:[#allocation5 + $0x70] sm:$0xff] }
  0x52   :  { %v150_v28 = vpack.c.bf16 %v125_v26, %v124_v25  ;;  %v127_v30 = vld [vmem:[#allocation5 + $0x78] sm:$0xff]  ;;  %v128_v31 = vld [vmem:[#allocation5 + $0x80] sm:$0xff]  ;;  %v129_v32 = vld [vmem:[#allocation5 + $0x88] sm:$0xff] }
  0x53   :  { %v151_v33 = vpack.c.bf16 %v127_v30, %v126_v29  ;;  %v152_v34 = vpack.c.bf16 %v129_v32, %v128_v31  ;;  %v130_v35 = vld [vmem:[#allocation5 + $0x90] sm:$0xff]  ;;  %v131_v36 = vld [vmem:[#allocation5 + $0x98] sm:$0xff]  ;;  %v132_v37 = vld [vmem:[#allocation5 + $0xa0] sm:$0xff] }
  0x54   :  { %1628 = vmatpush3.bf16.msra.mxu1 %v1730_v2  ;;  %v133_v38 = vld [vmem:[#allocation5 + $0xa8] sm:$0xff]  ;;  %v153_v39 = vpack.c.bf16 %v131_v36, %v130_v35  ;;  %v134_v41 = vld [vmem:[#allocation5 + $0xb0] sm:$0xff]  ;;  %v135_v42 = vld [vmem:[#allocation5 + $0xb8] sm:$0xff] }
  0x55   :  { %1629 = vmatprep.subr.bf16.mxu1 %v1731_v3  ;;  %v154_v40 = vpack.c.bf16 %v133_v38, %v132_v37  ;;  %v136_v43 = vld [vmem:[#allocation5 + $0xc0] sm:$0xff]  ;;  %v137_v44 = vld [vmem:[#allocation5 + $0xc8] sm:$0xff]  ;;  %v155_v45 = vpack.c.bf16 %v135_v42, %v134_v41  ;;  %v138_v47 = vld [vmem:[#allocation5 + $0xd0] sm:$0xff] }
  0x56   :  { %v156_v46 = vpack.c.bf16 %v137_v44, %v136_v43  ;;  %v139_v48 = vld [vmem:[#allocation5 + $0xd8] sm:$0xff]  ;;  %v140_v49 = vld [vmem:[#allocation5 + $0xe0] sm:$0xff]  ;;  %v141_v50 = vld [vmem:[#allocation5 + $0xe8] sm:$0xff] }
  0x57   :  { %v157_v51 = vpack.c.bf16 %v139_v48, %v138_v47  ;;  %v158_v52 = vpack.c.bf16 %v141_v50, %v140_v49  ;;  %v142_v53 = vld [vmem:[#allocation5 + $0xf0] sm:$0xff]  ;;  %v143_v54 = vld [vmem:[#allocation5 + $0xf8] sm:$0xff]  ;;  %v2047_v56 = vld [vmem:[#allocation2 + $0x4] ss:$8 sps:$4 sm:$0xff]  }
  0x58   :  { %1630 = vmatpush3.bf16.msra.mxu1 %v1731_v3  ;;  %v159_v55 = vpack.c.bf16 %v143_v54, %v142_v53  ;;  %v1784_v41 = vld [vmem:[#allocation8] sm:$0xff]   ;;  %v1785_v42 = vld [vmem:[#allocation8 + $0x8] sm:$0xff]   ;;  %v1786_v44 = vld [vmem:[#allocation8 + $0x10] sm:$0xff]  }
  0x59   :  { %1631 = vmatprep.subr.bf16.mxu1 %v1732_v7  ;;  %1671 = vmatprep.subr.bf16.mxu0 %v1784_v41  ;;  %v2050_v43 = vld [vmem:[#allocation2] ss:$8 sps:$4 sm:$0xff]   ;;  %v2056_v47 = vld [vmem:[#allocation2 + $0x10] ss:$8 sps:$4 sm:$0xff]   ;;  %v2058_v48 = vld [vmem:[#allocation2 + $0x24] ss:$8 sps:$4 sm:$0xff]  }
  0x5a   :  { %1672 = vmatpush3.bf16.msra.mxu0 %v1784_v41  ;;  %v2062_v49 = vld [vmem:[#allocation2 + $0x20] ss:$8 sps:$4 sm:$0xff]   ;;  %v2064_v50 = vld [vmem:[#allocation2 + $0x34] ss:$8 sps:$4 sm:$0xff]  }
  0x5b   :  { %1673 = vmatprep.subr.bf16.mxu0 %v1785_v42  ;;  %v2074_v53 = vld [vmem:[#allocation2 + $0x40] ss:$8 sps:$4 sm:$0xff]   ;;  %v2076_v54 = vld [vmem:[#allocation2 + $0x54] ss:$8 sps:$4 sm:$0xff]  }
  0x5c   :  { %1632 = vmatpush3.bf16.msra.mxu1 %v1732_v7 }
  0x5d   :  { %1633 = vmatprep.subr.bf16.mxu1 %v1733_v8 }
  0x5e   :  { %1674 = vmatpush3.bf16.msra.mxu0 %v1785_v42 }
  0x5f   :  { %1675 = vmatprep.subr.bf16.mxu0 %v1786_v44 }
  0x60   :  { %1634 = vmatpush3.bf16.msra.mxu1 %v1733_v8 }
  0x61   :  { %1635 = vmatprep.subr.bf16.mxu1 %v1734_v9 }
  0x62   :  { %1676 = vmatpush3.bf16.msra.mxu0 %v1786_v44 }
  0x64   :  { %1636 = vmatpush3.bf16.msra.mxu1 %v1734_v9 }
  0x65   :  { %1637 = vmatprep.subr.bf16.mxu1 %v1735_v10 }
  0x68   :  { %1638 = vmatpush3.bf16.msra.mxu1 %v1735_v10 }
  0x6b   :  { %1640 = vmatmul.mubr.bf16.vlgmr.msra.gmra.mrb[0].mxu1 %v145_v15 }
  0x6c   :  { %1643 = vmatprep.mubr.bf16.mxu1 %v146_v16 }
  0x73   :  { %1644 = vmatmul.mubr.bf16.gmra.mrb[4].mxu1 %v147_v21 }
  0x74   :  { %1647 = vmatprep.mubr.bf16.mxu1 %v148_v22 }
  0x7b   :  { %1648 = vmatmul.mubr.bf16.gmra.mrb[8].mxu1 %v149_v27 }
  0x7c   :  { %1651 = vmatprep.mubr.bf16.mxu1 %v150_v28 }
  0x83   :  { %1652 = vmatmul.mubr.bf16.gmra.mrb[12].mxu1 %v151_v33 }
  0x84   :  { %1655 = vmatprep.mubr.bf16.mxu1 %v152_v34 }
  0x8b   :  { %1656 = vmatmul.mubr.bf16.gmra.mrb[16].mxu1 %v153_v39 }
  0x8c   :  { %1659 = vmatprep.mubr.bf16.mxu1 %v154_v40 }
  0x93   :  { %1660 = vmatmul.mubr.bf16.gmra.mrb[20].mxu1 %v155_v45  ;;  %v2052_v45 = vld [vmem:[#allocation2 + $0x14] ss:$8 sps:$4 sm:$0xff]  }
  0x94   :  { %1663 = vmatprep.mubr.bf16.mxu1 %v156_v46  ;;  %v1787_v46 = vld [vmem:[#allocation8 + $0x18] sm:$0xff]  }
  0x95   :  { %1677 = vmatprep.subr.bf16.mxu0 %v1787_v46 }
  0x96   :  { %1678 = vmatpush3.bf16.msra.mxu0 %v1787_v46 }
  0x9b   :  { %1664 = vmatmul.mubr.bf16.gmra.mrb[24].mxu1 %v157_v51  ;;  %v2068_v51 = vld [vmem:[#allocation2 + $0x30] ss:$8 sps:$4 sm:$0xff]  }
  0x9c   :  { %1667 = vmatprep.mubr.bf16.mxu1 %v158_v52  ;;  %v2070_v52 = vld [vmem:[#allocation2 + $0x44] ss:$8 sps:$4 sm:$0xff]  }
  0xa3   :  { %1668 = vmatmul.mubr.bf16.gmra.mrb[28].mxu1 %v159_v55  ;;  %v2080_v55 = vld [vmem:[#allocation2 + $0x50] ss:$8 sps:$4 sm:$0xff]  }
  0xa4   :  { %600 = vmatprep.mubr.bf16.mxu1 %v2047_v56 }
 0x13e   :  { %v1641_v57 = vpop.f32.mrb[0].mxu1 }
 0x13f   :  { %v258_v58 = vpop.f32.mrb[1].mxu1 }
 0x140   :  { %v1642_v59 = vpop.f32.mrb[2].mxu1 }
 0x141   :  { %v386_v60 = vpack.c.bf16 %v1642_v59, %v1641_v57  ;;  %v261_v61 = vpop.f32.mrb[3].mxu1  ;;  %v2082_v57 = vld [vmem:[#allocation2 + $0x64] ss:$8 sps:$4 sm:$0xff]   ;;  %v2088_v59 = vld [vmem:[#allocation2 + $0x74] ss:$8 sps:$4 sm:$0xff]  }
 0x142   :  { %v385_v62 = vpack.c.bf16 %v261_v61, %v258_v58  ;;  %v2086_v58 = vld [vmem:[#allocation2 + $0x60] ss:$8 sps:$4 sm:$0xff]   ;;  %v2094_v61 = vld [vmem:[#allocation2 + $0x84] ss:$8 sps:$4 sm:$0xff]  }
 0x146   :  { %v1645_v63 = vpop.f32.mrb[4].mxu1 }
 0x147   :  { %v274_v0 = vpop.f32.mrb[5].mxu1 }
 0x148   :  { %v1646_v1 = vpop.f32.mrb[6].mxu1 }
 0x149   :  { %v388_v2 = vpack.c.bf16 %v1646_v1, %v1645_v63  ;;  %v277_v3 = vpop.f32.mrb[7].mxu1  ;;  %v2100_v63 = vld [vmem:[#allocation2 + $0x94] ss:$8 sps:$4 sm:$0xff]   ;;  %v2106_v1 = vld [vmem:[#allocation2 + $0xa4] ss:$8 sps:$4 sm:$0xff]  }
 0x14a   :  { %v387_v4 = vpack.c.bf16 %v277_v3, %v274_v0  ;;  %v2104_v0 = vld [vmem:[#allocation2 + $0x90] ss:$8 sps:$4 sm:$0xff]   ;;  %v2112_v3 = vld [vmem:[#allocation2 + $0xb4] ss:$8 sps:$4 sm:$0xff]  }
 0x14e   :  { %v1649_v5 = vpop.f32.mrb[8].mxu1 }
 0x14f   :  { %v290_v6 = vpop.f32.mrb[9].mxu1 }
 0x150   :  { %v1650_v7 = vpop.f32.mrb[10].mxu1 }
 0x151   :  { %v390_v8 = vpack.c.bf16 %v1650_v7, %v1649_v5  ;;  %v293_v9 = vpop.f32.mrb[11].mxu1  ;;  %v2118_v5 = vld [vmem:[#allocation2 + $0xc4] ss:$8 sps:$4 sm:$0xff]  }
 0x152   :  { %v389_v10 = vpack.c.bf16 %v293_v9, %v290_v6  ;;  %v1788_v6 = vld [vmem:[#allocation8 + $0x20] sm:$0xff]   ;;  %v1789_v7 = vld [vmem:[#allocation8 + $0x28] sm:$0xff]   ;;  %v2124_v9 = vld [vmem:[#allocation2 + $0xd4] ss:$8 sps:$4 sm:$0xff]  }
 0x153   :  { %1679 = vmatprep.subr.bf16.mxu0 %v1788_v6 }
 0x154   :  { %1680 = vmatpush3.bf16.msra.mxu0 %v1788_v6 }
 0x155   :  { %1681 = vmatprep.subr.bf16.mxu0 %v1789_v7 }
 0x156   :  { %v1653_v11 = vpop.f32.mrb[12].mxu1 }
 0x157   :  { %v306_v12 = vpop.f32.mrb[13].mxu1 }
 0x158   :  { %v1654_v13 = vpop.f32.mrb[14].mxu1  ;;  %1682 = vmatpush3.bf16.msra.mxu0 %v1789_v7 }
 0x159   :  { %v392_v14 = vpack.c.bf16 %v1654_v13, %v1653_v11  ;;  %v309_v15 = vpop.f32.mrb[15].mxu1  ;;  %v1791_v11 = vld [vmem:[#allocation8 + $0x38] sm:$0xff]   ;;  %v2130_v13 = vld [vmem:[#allocation2 + $0xe4] ss:$8 sps:$4 sm:$0xff]  }
 0x15a   :  { %v391_v16 = vpack.c.bf16 %v309_v15, %v306_v12  ;;  %v2128_v12 = vld [vmem:[#allocation2 + $0xd0] ss:$8 sps:$4 sm:$0xff]   ;;  %v2136_v15 = vld [vmem:[#allocation2 + $0xf4] ss:$8 sps:$4 sm:$0xff]  }
 0x15e   :  { %v1657_v17 = vpop.f32.mrb[16].mxu1 }
 0x15f   :  { %v322_v18 = vpop.f32.mrb[17].mxu1 }
 0x160   :  { %v1658_v19 = vpop.f32.mrb[18].mxu1 }
 0x161   :  { %v394_v20 = vpack.c.bf16 %v1658_v19, %v1657_v17  ;;  %v325_v21 = vpop.f32.mrb[19].mxu1  ;;  %v2146_v19 = vld [vmem:[%s2267_s3] ss:$0 sm:$0xff] }
 0x162   :  { %v393_v22 = vpack.c.bf16 %v325_v21, %v322_v18 }
 0x164   :  { %1375 = vmatprep.subr.bf16.mxu1 %v393_v22 }
 0x165   :  { %1376 = vmatpush3.bf16.msra.mxu1 %v385_v62  ;;  %v2098_v62 = vld [vmem:[#allocation2 + $0x80] ss:$8 sps:$4 sm:$0xff]  }
 0x166   :  { %v1661_v23 = vpop.f32.mrb[20].mxu1  ;;  %1377 = vmatprep.subr.bf16.mxu1 %v394_v20 }
 0x167   :  { %v338_v24 = vpop.f32.mrb[21].mxu1 }
 0x168   :  { %v1662_v25 = vpop.f32.mrb[22].mxu1 }
 0x169   :  { %v396_v26 = vpack.c.bf16 %v1662_v25, %v1661_v23  ;;  %v341_v27 = vpop.f32.mrb[23].mxu1  ;;  %1378 = vmatpush3.bf16.msra.mxu1 %v386_v60  ;;  %v2092_v60 = vld [vmem:[#allocation2 + $0x70] ss:$8 sps:$4 sm:$0xff]  }
 0x16a   :  { %v395_v28 = vpack.c.bf16 %v341_v27, %v338_v24 }
 0x16c   :  { %1379 = vmatprep.subr.bf16.mxu1 %v395_v28 }
 0x16d   :  { %1380 = vmatpush3.bf16.msra.mxu1 %v387_v4  ;;  %v2116_v4 = vld [vmem:[#allocation2 + $0xb0] ss:$8 sps:$4 sm:$0xff]  }
 0x16e   :  { %v1665_v29 = vpop.f32.mrb[24].mxu1  ;;  %1381 = vmatprep.subr.bf16.mxu1 %v396_v26 }
 0x16f   :  { %v354_v30 = vpop.f32.mrb[25].mxu1 }
 0x170   :  { %v1666_v31 = vpop.f32.mrb[26].mxu1 }
 0x171   :  { %v398_v32 = vpack.c.bf16 %v1666_v31, %v1665_v29  ;;  %v357_v33 = vpop.f32.mrb[27].mxu1  ;;  %1382 = vmatpush3.bf16.msra.mxu1 %v388_v2  ;;  %v2110_v2 = vld [vmem:[#allocation2 + $0xa0] ss:$8 sps:$4 sm:$0xff]  }
 0x172   :  { %v397_v34 = vpack.c.bf16 %v357_v33, %v354_v30 }
 0x174   :  { %1383 = vmatprep.subr.bf16.mxu1 %v397_v34 }
 0x175   :  { %1384 = vmatpush3.bf16.msra.mxu1 %v389_v10  ;;  %v1790_v10 = vld [vmem:[#allocation8 + $0x30] sm:$0xff]  }
 0x176   :  { %v1669_v35 = vpop.f32.mrb[28].mxu1  ;;  %1385 = vmatprep.subr.bf16.mxu1 %v398_v32  ;;  %1683 = vmatprep.subr.bf16.mxu0 %v1790_v10 }
 0x177   :  { %v370_v36 = vpop.f32.mrb[29].mxu1  ;;  %1684 = vmatpush3.bf16.msra.mxu0 %v1790_v10 }
 0x178   :  { %v1670_v37 = vpop.f32.mrb[30].mxu1  ;;  %1685 = vmatprep.subr.bf16.mxu0 %v1791_v11 }
 0x179   :  { %v400_v38 = vpack.c.bf16 %v1670_v37, %v1669_v35  ;;  %v373_v39 = vpop.f32.mrb[31].mxu1  ;;  %1386 = vmatpush3.bf16.msra.mxu1 %v390_v8  ;;  %v2122_v8 = vld [vmem:[#allocation2 + $0xc0] ss:$8 sps:$4 sm:$0xff]  }
 0x17a   :  { %v399_v40 = vpack.c.bf16 %v373_v39, %v370_v36 }
 0x17b   :  { %1686 = vmatpush3.bf16.msra.mxu0 %v1791_v11 }
 0x17c   :  { %1387 = vmatprep.subr.bf16.mxu1 %v399_v40 }
 0x17d   :  { %1388 = vmatpush3.bf16.msra.mxu1 %v391_v16  ;;  %v2140_v16 = vld [vmem:[#allocation2 + $0xf0] ss:$8 sps:$4 sm:$0xff]  }
 0x17e   :  { %1389 = vmatprep.subr.bf16.mxu1 %v400_v38 }
 0x181   :  { %1390 = vmatpush3.bf16.msra.mxu1 %v392_v14  ;;  %v2134_v14 = vld [vmem:[#allocation2 + $0xe0] ss:$8 sps:$4 sm:$0xff]  }
 0x184   :  { %601 = vmatmul.mubr.bf16.vlgmr.msra.gmra.mrb[32].mxu1 %v2050_v43 }
 0x185   :  { %608 = vmatprep.mubr.bf16.mxu1 %v2052_v45 }
 0x18c   :  { %609 = vmatmul.mubr.bf16.gmra.mrb[36].mxu1 %v2056_v47 }
 0x18d   :  { %616 = vmatprep.mubr.bf16.mxu1 %v2058_v48 }
 0x194   :  { %617 = vmatmul.mubr.bf16.gmra.mrb[40].mxu1 %v2062_v49 }
 0x195   :  { %624 = vmatprep.mubr.bf16.mxu1 %v2064_v50 }
 0x19c   :  { %625 = vmatmul.mubr.bf16.gmra.mrb[44].mxu1 %v2068_v51 }
 0x19d   :  { %632 = vmatprep.mubr.bf16.mxu1 %v2070_v52 }
 0x1a4   :  { %633 = vmatmul.mubr.bf16.gmra.mrb[48].mxu1 %v2074_v53 }
 0x1a5   :  { %640 = vmatprep.mubr.bf16.mxu1 %v2076_v54 }
 0x1ac   :  { %641 = vmatmul.mubr.bf16.gmra.mrb[52].mxu1 %v2080_v55 }
 0x1ad   :  { %648 = vmatprep.mubr.bf16.mxu1 %v2082_v57 }
 0x1b4   :  { %649 = vmatmul.mubr.bf16.gmra.mrb[56].mxu1 %v2086_v58 }
 0x1b5   :  { %656 = vmatprep.mubr.bf16.mxu1 %v2088_v59 }
 0x1bc   :  { %657 = vmatmul.mubr.bf16.gmra.mrb[60].mxu1 %v2092_v60 }
 0x1bd   :  { %664 = vmatprep.mubr.bf16.mxu1 %v2094_v61 }
 0x1c4   :  { %665 = vmatmul.mubr.bf16.gmra.mrb[64].mxu1 %v2098_v62 }
 0x1c5   :  { %672 = vmatprep.mubr.bf16.mxu1 %v2100_v63 }
 0x1cc   :  { %673 = vmatmul.mubr.bf16.gmra.mrb[68].mxu1 %v2104_v0 }
 0x1cd   :  { %680 = vmatprep.mubr.bf16.mxu1 %v2106_v1 }
 0x1d4   :  { %681 = vmatmul.mubr.bf16.gmra.mrb[72].mxu1 %v2110_v2 }
 0x1d5   :  { %688 = vmatprep.mubr.bf16.mxu1 %v2112_v3 }
 0x1dc   :  { %689 = vmatmul.mubr.bf16.gmra.mrb[76].mxu1 %v2116_v4 }
 0x1dd   :  { %696 = vmatprep.mubr.bf16.mxu1 %v2118_v5 }
 0x1e4   :  { %697 = vmatmul.mubr.bf16.gmra.mrb[80].mxu1 %v2122_v8 }
 0x1e5   :  { %704 = vmatprep.mubr.bf16.mxu1 %v2124_v9 }
 0x1ec   :  { %705 = vmatmul.mubr.bf16.gmra.mrb[84].mxu1 %v2128_v12 }
 0x1ed   :  { %712 = vmatprep.mubr.bf16.mxu1 %v2130_v13 }
 0x1f4   :  { %713 = vmatmul.mubr.bf16.gmra.mrb[88].mxu1 %v2134_v14 }
 0x1f5   :  { %720 = vmatprep.mubr.bf16.mxu1 %v2136_v15 }
 0x1fc   :  { %721 = vmatmul.mubr.bf16.gmra.mrb[92].mxu1 %v2140_v16 }
 0x257   :  { %v1391_v17 = vpop.f32.mrb[32].mxu1 }
 0x258   :  { %v1392_v18 = vpop.f32.mrb[33].mxu1 }
 0x259   :  { %v1393_v20 = vadd.f32 %v1392_v18, %v1391_v17  ;;  %v1394_v21 = vpop.f32.mrb[34].mxu1 }
 0x25a   :  { %v1395_v22 = vpop.f32.mrb[35].mxu1 }
 0x25b   :  { %v1396_v23 = vadd.f32 %v1395_v22, %v1394_v21  ;;  %v603_v24 = vadd.f32 %v1393_v20, %v2146_v19 }
 0x25d   :  { %v606_v25 = vadd.f32 %v1396_v23, %v2146_v19  ;;  %v729_v27 = vmax.f32 %v603_v24, 0.0 }
 0x25f   :  { %v1397_v26 = vpop.f32.mrb[36].mxu1  ;;  %v730_v28 = vmax.f32 %v606_v25, 0.0 }
 0x260   :  { %v1398_v29 = vpop.f32.mrb[37].mxu1 }
 0x261   :  { %v1399_v30 = vadd.f32 %v1398_v29, %v1397_v26  ;;  %v1400_v31 = vpop.f32.mrb[38].mxu1  ;;  %v761_v32 = vpack.c.bf16 %v730_v28, %v729_v27 }
 0x262   :  { %v1401_v33 = vpop.f32.mrb[39].mxu1 }
 0x263   :  { %v611_v34 = vadd.f32 %v1399_v30, %v2146_v19  ;;  %v1402_v35 = vadd.f32 %v1401_v33, %v1400_v31  ;;  %1687 = vmatprep.mubr.bf16.mxu0 %v761_v32 }
 0x265   :  { %v614_v36 = vadd.f32 %v1402_v35, %v2146_v19  ;;  %v731_v37 = vmax.f32 %v611_v34, 0.0 }
 0x267   :  { %v732_v38 = vmax.f32 %v614_v36, 0.0  ;;  %v1403_v39 = vpop.f32.mrb[40].mxu1 }
 0x268   :  { %v1404_v40 = vpop.f32.mrb[41].mxu1 }
 0x269   :  { %v1405_v41 = vadd.f32 %v1404_v40, %v1403_v39  ;;  %v762_v42 = vpack.c.bf16 %v732_v38, %v731_v37  ;;  %v1406_v44 = vpop.f32.mrb[42].mxu1 }
 0x26a   :  { %v1407_v46 = vpop.f32.mrb[43].mxu1 }
 0x26b   :  { %v619_v6 = vadd.f32 %v1405_v41, %v2146_v19  ;;  %1688 = vmatmul.mubr.bf16.vlgmr.msra.gmra.mrb[0].mxu0 %v762_v42  ;;  %v1408_v7 = vadd.f32 %v1407_v46, %v1406_v44 }
 0x26d   :  { %v622_v10 = vadd.f32 %v1408_v7, %v2146_v19  ;;  %v733_v11 = vmax.f32 %v619_v6, 0.0 }
 0x26f   :  { %v734_v17 = vmax.f32 %v622_v10, 0.0  ;;  %v1409_v18 = vpop.f32.mrb[44].mxu1 }
 0x270   :  { %v1410_v20 = vpop.f32.mrb[45].mxu1 }
 0x271   :  { %v1411_v21 = vadd.f32 %v1410_v20, %v1409_v18  ;;  %v1412_v22 = vpop.f32.mrb[46].mxu1  ;;  %v763_v23 = vpack.c.bf16 %v734_v17, %v733_v11 }
 0x272   :  { %v1413_v24 = vpop.f32.mrb[47].mxu1 }
 0x273   :  { %v627_v25 = vadd.f32 %v1411_v21, %v2146_v19  ;;  %v1414_v26 = vadd.f32 %v1413_v24, %v1412_v22  ;;  %1691 = vmatprep.mubr.bf16.mxu0 %v763_v23 }
 0x275   :  { %v630_v27 = vadd.f32 %v1414_v26, %v2146_v19  ;;  %v735_v28 = vmax.f32 %v627_v25, 0.0 }
 0x277   :  { %v736_v29 = vmax.f32 %v630_v27, 0.0  ;;  %v1415_v30 = vpop.f32.mrb[48].mxu1 }
 0x278   :  { %v1416_v31 = vpop.f32.mrb[49].mxu1 }
 0x279   :  { %v1417_v32 = vadd.f32 %v1416_v31, %v1415_v30  ;;  %v1418_v33 = vpop.f32.mrb[50].mxu1  ;;  %v764_v34 = vpack.c.bf16 %v736_v29, %v735_v28 }
 0x27a   :  { %v1419_v35 = vpop.f32.mrb[51].mxu1 }
 0x27b   :  { %v635_v36 = vadd.f32 %v1417_v32, %v2146_v19  ;;  %1692 = vmatmul.mubr.bf16.gmra.mrb[4].mxu0 %v764_v34  ;;  %v1420_v37 = vadd.f32 %v1419_v35, %v1418_v33 }
 0x27d   :  { %v638_v38 = vadd.f32 %v1420_v37, %v2146_v19  ;;  %v737_v39 = vmax.f32 %v635_v36, 0.0 }
 0x27f   :  { %v738_v40 = vmax.f32 %v638_v38, 0.0  ;;  %v1421_v41 = vpop.f32.mrb[52].mxu1 }
 0x280   :  { %v1422_v42 = vpop.f32.mrb[53].mxu1 }
 0x281   :  { %v1423_v44 = vadd.f32 %v1422_v42, %v1421_v41  ;;  %v1424_v46 = vpop.f32.mrb[54].mxu1  ;;  %v765_v6 = vpack.c.bf16 %v738_v40, %v737_v39 }
 0x282   :  { %v1425_v7 = vpop.f32.mrb[55].mxu1 }
 0x283   :  { %v643_v10 = vadd.f32 %v1423_v44, %v2146_v19  ;;  %v1426_v11 = vadd.f32 %v1425_v7, %v1424_v46  ;;  %1695 = vmatprep.mubr.bf16.mxu0 %v765_v6 }
 0x285   :  { %v646_v17 = vadd.f32 %v1426_v11, %v2146_v19  ;;  %v739_v18 = vmax.f32 %v643_v10, 0.0 }
 0x287   :  { %v740_v20 = vmax.f32 %v646_v17, 0.0  ;;  %v1427_v21 = vpop.f32.mrb[56].mxu1 }
 0x288   :  { %v1428_v22 = vpop.f32.mrb[57].mxu1 }
 0x289   :  { %v1429_v23 = vadd.f32 %v1428_v22, %v1427_v21  ;;  %v1430_v24 = vpop.f32.mrb[58].mxu1  ;;  %v766_v25 = vpack.c.bf16 %v740_v20, %v739_v18 }
 0x28a   :  { %v1431_v26 = vpop.f32.mrb[59].mxu1 }
 0x28b   :  { %v651_v27 = vadd.f32 %v1429_v23, %v2146_v19  ;;  %v1432_v28 = vadd.f32 %v1431_v26, %v1430_v24  ;;  %1696 = vmatmul.mubr.bf16.gmra.mrb[8].mxu0 %v766_v25 }
 0x28d   :  { %v654_v29 = vadd.f32 %v1432_v28, %v2146_v19  ;;  %v741_v30 = vmax.f32 %v651_v27, 0.0 }
 0x28f   :  { %v742_v31 = vmax.f32 %v654_v29, 0.0  ;;  %v1433_v32 = vpop.f32.mrb[60].mxu1 }
 0x290   :  { %v1434_v33 = vpop.f32.mrb[61].mxu1 }
 0x291   :  { %v1435_v34 = vadd.f32 %v1434_v33, %v1433_v32  ;;  %v1436_v35 = vpop.f32.mrb[62].mxu1  ;;  %v767_v36 = vpack.c.bf16 %v742_v31, %v741_v30 }
 0x292   :  { %v1437_v37 = vpop.f32.mrb[63].mxu1 }
 0x293   :  { %v659_v38 = vadd.f32 %v1435_v34, %v2146_v19  ;;  %v1438_v39 = vadd.f32 %v1437_v37, %v1436_v35  ;;  %1699 = vmatprep.mubr.bf16.mxu0 %v767_v36 }
 0x295   :  { %v662_v40 = vadd.f32 %v1438_v39, %v2146_v19  ;;  %v743_v41 = vmax.f32 %v659_v38, 0.0 }
 0x297   :  { %v744_v42 = vmax.f32 %v662_v40, 0.0  ;;  %v1439_v44 = vpop.f32.mrb[64].mxu1 }
 0x298   :  { %v1440_v46 = vpop.f32.mrb[65].mxu1 }
 0x299   :  { %v1441_v6 = vadd.f32 %v1440_v46, %v1439_v44  ;;  %v1442_v7 = vpop.f32.mrb[66].mxu1  ;;  %v768_v10 = vpack.c.bf16 %v744_v42, %v743_v41 }
 0x29a   :  { %v1443_v11 = vpop.f32.mrb[67].mxu1 }
 0x29b   :  { %v667_v17 = vadd.f32 %v1441_v6, %v2146_v19  ;;  %v1444_v18 = vadd.f32 %v1443_v11, %v1442_v7  ;;  %1700 = vmatmul.mubr.bf16.gmra.mrb[12].mxu0 %v768_v10 }
 0x29d   :  { %v670_v20 = vadd.f32 %v1444_v18, %v2146_v19  ;;  %v745_v21 = vmax.f32 %v667_v17, 0.0 }
 0x29f   :  { %v746_v22 = vmax.f32 %v670_v20, 0.0  ;;  %v1445_v23 = vpop.f32.mrb[68].mxu1 }
 0x2a0   :  { %v1446_v24 = vpop.f32.mrb[69].mxu1 }
 0x2a1   :  { %v1447_v25 = vadd.f32 %v1446_v24, %v1445_v23  ;;  %v1448_v26 = vpop.f32.mrb[70].mxu1  ;;  %v769_v27 = vpack.c.bf16 %v746_v22, %v745_v21 }
 0x2a2   :  { %v1449_v28 = vpop.f32.mrb[71].mxu1 }
 0x2a3   :  { %v675_v29 = vadd.f32 %v1447_v25, %v2146_v19  ;;  %v1450_v30 = vadd.f32 %v1449_v28, %v1448_v26  ;;  %1703 = vmatprep.mubr.bf16.mxu0 %v769_v27 }
 0x2a5   :  { %v678_v31 = vadd.f32 %v1450_v30, %v2146_v19  ;;  %v747_v32 = vmax.f32 %v675_v29, 0.0 }
 0x2a7   :  { %v748_v33 = vmax.f32 %v678_v31, 0.0  ;;  %v1451_v34 = vpop.f32.mrb[72].mxu1 }
 0x2a8   :  { %v1452_v35 = vpop.f32.mrb[73].mxu1 }
 0x2a9   :  { %v770_v36 = vpack.c.bf16 %v748_v33, %v747_v32  ;;  %v1453_v37 = vadd.f32 %v1452_v35, %v1451_v34  ;;  %v1454_v38 = vpop.f32.mrb[74].mxu1 }
 0x2aa   :  { %v1455_v39 = vpop.f32.mrb[75].mxu1 }
 0x2ab   :  { %1704 = vmatmul.mubr.bf16.gmra.mrb[16].mxu0 %v770_v36  ;;  %v683_v40 = vadd.f32 %v1453_v37, %v2146_v19  ;;  %v1456_v41 = vadd.f32 %v1455_v39, %v1454_v38 }
 0x2ad   :  { %v686_v42 = vadd.f32 %v1456_v41, %v2146_v19  ;;  %v749_v44 = vmax.f32 %v683_v40, 0.0 }
 0x2af   :  { %v750_v46 = vmax.f32 %v686_v42, 0.0  ;;  %v1457_v6 = vpop.f32.mrb[76].mxu1 }
 0x2b0   :  { %v1458_v7 = vpop.f32.mrb[77].mxu1 }
 0x2b1   :  { %v1459_v10 = vadd.f32 %v1458_v7, %v1457_v6  ;;  %v1460_v11 = vpop.f32.mrb[78].mxu1  ;;  %v771_v17 = vpack.c.bf16 %v750_v46, %v749_v44 }
 0x2b2   :  { %v1461_v18 = vpop.f32.mrb[79].mxu1 }
 0x2b3   :  { %v691_v20 = vadd.f32 %v1459_v10, %v2146_v19  ;;  %v1462_v21 = vadd.f32 %v1461_v18, %v1460_v11  ;;  %1707 = vmatprep.mubr.bf16.mxu0 %v771_v17 }
 0x2b5   :  { %v694_v22 = vadd.f32 %v1462_v21, %v2146_v19  ;;  %v751_v23 = vmax.f32 %v691_v20, 0.0 }
 0x2b7   :  { %v752_v24 = vmax.f32 %v694_v22, 0.0  ;;  %v1463_v25 = vpop.f32.mrb[80].mxu1 }
 0x2b8   :  { %v1464_v26 = vpop.f32.mrb[81].mxu1 }
 0x2b9   :  { %v772_v27 = vpack.c.bf16 %v752_v24, %v751_v23  ;;  %v1465_v28 = vadd.f32 %v1464_v26, %v1463_v25  ;;  %v1466_v29 = vpop.f32.mrb[82].mxu1 }
 0x2ba   :  { %v1467_v30 = vpop.f32.mrb[83].mxu1 }
 0x2bb   :  { %1708 = vmatmul.mubr.bf16.gmra.mrb[20].mxu0 %v772_v27  ;;  %v699_v31 = vadd.f32 %v1465_v28, %v2146_v19  ;;  %v1468_v32 = vadd.f32 %v1467_v30, %v1466_v29 }
 0x2bd   :  { %v702_v33 = vadd.f32 %v1468_v32, %v2146_v19  ;;  %v753_v34 = vmax.f32 %v699_v31, 0.0 }
 0x2bf   :  { %v754_v35 = vmax.f32 %v702_v33, 0.0  ;;  %v1469_v36 = vpop.f32.mrb[84].mxu1 }
 0x2c0   :  { %v1470_v37 = vpop.f32.mrb[85].mxu1 }
 0x2c1   :  { %v1471_v38 = vadd.f32 %v1470_v37, %v1469_v36  ;;  %v1472_v39 = vpop.f32.mrb[86].mxu1  ;;  %v773_v40 = vpack.c.bf16 %v754_v35, %v753_v34 }
 0x2c2   :  { %v1473_v41 = vpop.f32.mrb[87].mxu1 }
 0x2c3   :  { %v707_v42 = vadd.f32 %v1471_v38, %v2146_v19  ;;  %v1474_v44 = vadd.f32 %v1473_v41, %v1472_v39  ;;  %1711 = vmatprep.mubr.bf16.mxu0 %v773_v40 }
 0x2c5   :  { %v710_v46 = vadd.f32 %v1474_v44, %v2146_v19  ;;  %v755_v6 = vmax.f32 %v707_v42, 0.0 }
 0x2c7   :  { %v756_v7 = vmax.f32 %v710_v46, 0.0  ;;  %v1475_v10 = vpop.f32.mrb[88].mxu1 }
 0x2c8   :  { %v1476_v11 = vpop.f32.mrb[89].mxu1 }
 0x2c9   :  { %v774_v17 = vpack.c.bf16 %v756_v7, %v755_v6  ;;  %v1477_v18 = vadd.f32 %v1476_v11, %v1475_v10  ;;  %v1478_v20 = vpop.f32.mrb[90].mxu1 }
 0x2ca   :  { %v1479_v21 = vpop.f32.mrb[91].mxu1 }
 0x2cb   :  { %1712 = vmatmul.mubr.bf16.gmra.mrb[24].mxu0 %v774_v17  ;;  %v715_v22 = vadd.f32 %v1477_v18, %v2146_v19  ;;  %v1480_v23 = vadd.f32 %v1479_v21, %v1478_v20 }
 0x2cd   :  { %v718_v24 = vadd.f32 %v1480_v23, %v2146_v19  ;;  %v757_v25 = vmax.f32 %v715_v22, 0.0 }
 0x2cf   :  { %v758_v26 = vmax.f32 %v718_v24, 0.0  ;;  %v1481_v27 = vpop.f32.mrb[92].mxu1 }
 0x2d0   :  { %v1482_v28 = vpop.f32.mrb[93].mxu1 }
 0x2d1   :  { %v1483_v29 = vadd.f32 %v1482_v28, %v1481_v27  ;;  %v1484_v30 = vpop.f32.mrb[94].mxu1  ;;  %v775_v31 = vpack.c.bf16 %v758_v26, %v757_v25 }
 0x2d2   :  { %v1485_v32 = vpop.f32.mrb[95].mxu1 }
 0x2d3   :  { %v723_v33 = vadd.f32 %v1483_v29, %v2146_v19  ;;  %v1486_v34 = vadd.f32 %v1485_v32, %v1484_v30  ;;  %1715 = vmatprep.mubr.bf16.mxu0 %v775_v31 }
 0x2d5   :  { %v726_v35 = vadd.f32 %v1486_v34, %v2146_v19  ;;  %v759_v36 = vmax.f32 %v723_v33, 0.0 }
 0x2d7   :  { %v760_v37 = vmax.f32 %v726_v35, 0.0 }
 0x2d9   :  { %v776_v38 = vpack.c.bf16 %v760_v37, %v759_v36 }
 0x2db   :  { %1716 = vmatmul.mubr.bf16.gmra.mrb[28].mxu0 %v776_v38 }
 0x2dc   :  { %1057 = vmatprep.mubr.bf16.mxu0 %v2047_v56 }
 0x33e   :  { %v1689_v39 = vpop.f32.mrb[0].mxu0 }
 0x33f   :  { %v875_v40 = vpop.f32.mrb[1].mxu0 }
 0x340   :  { %v1690_v41 = vpop.f32.mrb[2].mxu0 }
 0x341   :  { %v1003_v42 = vpack.c.bf16 %v1690_v41, %v1689_v39  ;;  %v878_v44 = vpop.f32.mrb[3].mxu0 }
 0x342   :  { %v1002_v46 = vpack.c.bf16 %v878_v44, %v875_v40 }
 0x34e   :  { %v1693_v6 = vpop.f32.mrb[4].mxu0 }
 0x34f   :  { %v891_v7 = vpop.f32.mrb[5].mxu0 }
 0x350   :  { %v1694_v10 = vpop.f32.mrb[6].mxu0 }
 0x351   :  { %v1005_v11 = vpack.c.bf16 %v1694_v10, %v1693_v6  ;;  %v894_v17 = vpop.f32.mrb[7].mxu0 }
 0x352   :  { %v1004_v18 = vpack.c.bf16 %v894_v17, %v891_v7 }
 0x35e   :  { %v1697_v20 = vpop.f32.mrb[8].mxu0 }
 0x35f   :  { %v907_v19 = vpop.f32.mrb[9].mxu0 }
 0x360   :  { %v1698_v21 = vpop.f32.mrb[10].mxu0 }
 0x361   :  { %v1007_v22 = vpack.c.bf16 %v1698_v21, %v1697_v20  ;;  %v910_v23 = vpop.f32.mrb[11].mxu0 }
 0x362   :  { %v1006_v24 = vpack.c.bf16 %v910_v23, %v907_v19 }
 0x36e   :  { %v1701_v25 = vpop.f32.mrb[12].mxu0 }
 0x36f   :  { %v923_v56 = vpop.f32.mrb[13].mxu0 }
 0x370   :  { %v1702_v26 = vpop.f32.mrb[14].mxu0 }
 0x371   :  { %v1009_v27 = vpack.c.bf16 %v1702_v26, %v1701_v25  ;;  %v926_v28 = vpop.f32.mrb[15].mxu0  ;;  %v1796_v26 = vld [vmem:[#allocation5 + $0x20] sm:$0xff] }
 0x372   :  { %v1008_v29 = vpack.c.bf16 %v926_v28, %v923_v56 }
 0x37e   :  { %v1705_v30 = vpop.f32.mrb[16].mxu0 }
 0x37f   :  { %v939_v31 = vpop.f32.mrb[17].mxu0 }
 0x380   :  { %v1706_v32 = vpop.f32.mrb[18].mxu0 }
 0x381   :  { %v1011_v33 = vpack.c.bf16 %v1706_v32, %v1705_v30  ;;  %v942_v34 = vpop.f32.mrb[19].mxu0  ;;  %v1797_v30 = vld [vmem:[#allocation5 + $0x28] sm:$0xff] }
 0x382   :  { %v1010_v35 = vpack.c.bf16 %v942_v34, %v939_v31 }
 0x384   :  { %1511 = vmatprep.subr.bf16.mxu0 %v1010_v35 }
 0x385   :  { %1512 = vmatpush3.bf16.msra.mxu0 %v1002_v46 }
 0x386   :  { %1513 = vmatprep.subr.bf16.mxu0 %v1011_v33 }
 0x389   :  { %1514 = vmatpush3.bf16.msra.mxu0 %v1003_v42 }
 0x38e   :  { %v1709_v36 = vpop.f32.mrb[20].mxu0 }
 0x38f   :  { %v955_v37 = vpop.f32.mrb[21].mxu0 }
 0x390   :  { %v1710_v38 = vpop.f32.mrb[22].mxu0 }
 0x391   :  { %v1013_v39 = vpack.c.bf16 %v1710_v38, %v1709_v36  ;;  %v958_v40 = vpop.f32.mrb[23].mxu0 }
 0x392   :  { %v1012_v41 = vpack.c.bf16 %v958_v40, %v955_v37  ;;  %v1798_v40 = vld [vmem:[#allocation5 + $0x30] sm:$0xff] }
 0x394   :  { %1515 = vmatprep.subr.bf16.mxu0 %v1012_v41 }
 0x395   :  { %1516 = vmatpush3.bf16.msra.mxu0 %v1004_v18 }
 0x396   :  { %1517 = vmatprep.subr.bf16.mxu0 %v1013_v39 }
 0x399   :  { %1518 = vmatpush3.bf16.msra.mxu0 %v1005_v11 }
 0x39e   :  { %v1713_v44 = vpop.f32.mrb[24].mxu0 }
 0x39f   :  { %v971_v6 = vpop.f32.mrb[25].mxu0 }
 0x3a0   :  { %v1714_v7 = vpop.f32.mrb[26].mxu0 }
 0x3a1   :  { %v1015_v10 = vpack.c.bf16 %v1714_v7, %v1713_v44  ;;  %v974_v17 = vpop.f32.mrb[27].mxu0  ;;  %v1799_v7 = vld [vmem:[#allocation5 + $0x38] sm:$0xff] }
 0x3a2   :  { %v1014_v20 = vpack.c.bf16 %v974_v17, %v971_v6 }
 0x3a4   :  { %1519 = vmatprep.subr.bf16.mxu0 %v1014_v20 }
 0x3a5   :  { %1520 = vmatpush3.bf16.msra.mxu0 %v1006_v24 }
 0x3a6   :  { %1521 = vmatprep.subr.bf16.mxu0 %v1015_v10 }
 0x3a9   :  { %1522 = vmatpush3.bf16.msra.mxu0 %v1007_v22 }
 0x3ae   :  { %v1717_v42 = vpop.f32.mrb[28].mxu0 }
 0x3af   :  { %v987_v46 = vpop.f32.mrb[29].mxu0 }
 0x3b0   :  { %v1718_v19 = vpop.f32.mrb[30].mxu0 }
 0x3b1   :  { %v1017_v21 = vpack.c.bf16 %v1718_v19, %v1717_v42  ;;  %v990_v23 = vpop.f32.mrb[31].mxu0 }
 0x3b2   :  { %v1016_v25 = vpack.c.bf16 %v990_v23, %v987_v46 }
 0x3b4   :  { %1523 = vmatprep.subr.bf16.mxu0 %v1016_v25 }
 0x3b5   :  { %1524 = vmatpush3.bf16.msra.mxu0 %v1008_v29 }
 0x3b6   :  { %1525 = vmatprep.subr.bf16.mxu0 %v1017_v21 }
 0x3b9   :  { %1526 = vmatpush3.bf16.msra.mxu0 %v1009_v27 }
 0x3bc   :  { %1058 = vmatmul.mubr.bf16.vlgmr.msra.gmra.mrb[32].mxu0 %v2050_v43 }
 0x3bd   :  { %1065 = vmatprep.mubr.bf16.mxu0 %v2052_v45  ;;  %v2215_v45 = vld [vmem:[%s2269_s5] ss:$0 sm:$0xff]  ;;  %s1950_s5 = smov [#allocation10]  }
 0x3be   :  { %s1287_s26 = sshll.u32 %s1950_s5, 4  ;;  %s1288_s26 = int_to_ptr.vmem [resolvable:$true] %s1287_s26 }
 0x3bf   :  { %s1912_s27 = scalar_lea.vmem %s1288_s26, 4096  ;;  %p1917_p5 = scmp.lt.s32.totalorder %s1288_s26, %s1288_s26 }
 0x3c0   :  { %p1913_p4 = scmp.ne.s32.totalorder %s1288_s26, %s1912_s27  ;;  %p1918_p6 = scmp.lt.s32.totalorder %s1912_s27, %s1912_s27 }
 0x3c2   :  { %p1919_p7 = por %p1918_p6, %p1917_p5 }
 0x3c4   :  { %1066 = vmatmul.mubr.bf16.gmra.mrb[36].mxu0 %v2056_v47  ;;  %p1920_p8 = pnand %p1919_p7, %p1913_p4 }
 0x3c5   :  { %1073 = vmatprep.mubr.bf16.mxu0 %v2058_v48 }
 0x3cc   :  { %1074 = vmatmul.mubr.bf16.gmra.mrb[40].mxu0 %v2062_v49 }
 0x3cd   :  { %1081 = vmatprep.mubr.bf16.mxu0 %v2064_v50 }
 0x3d4   :  { %1082 = vmatmul.mubr.bf16.gmra.mrb[44].mxu0 %v2068_v51 }
 0x3d5   :  { %1089 = vmatprep.mubr.bf16.mxu0 %v2070_v52 }
 0x3dc   :  { %1090 = vmatmul.mubr.bf16.gmra.mrb[48].mxu0 %v2074_v53  ;;  %v1792_v53 = vld [vmem:[#allocation5] sm:$0xff] }
 0x3dd   :  { %1097 = vmatprep.mubr.bf16.mxu0 %v2076_v54 }
 0x3e4   :  { %1098 = vmatmul.mubr.bf16.gmra.mrb[52].mxu0 %v2080_v55 }
 0x3e5   :  { %1105 = vmatprep.mubr.bf16.mxu0 %v2082_v57 }
 0x3ec   :  { %1106 = vmatmul.mubr.bf16.gmra.mrb[56].mxu0 %v2086_v58  ;;  %v1793_v58 = vld [vmem:[#allocation5 + $0x8] sm:$0xff] }
 0x3ed   :  { %1113 = vmatprep.mubr.bf16.mxu0 %v2088_v59 }
 0x3f4   :  { %1114 = vmatmul.mubr.bf16.gmra.mrb[60].mxu0 %v2092_v60 }
 0x3f5   :  { %1121 = vmatprep.mubr.bf16.mxu0 %v2094_v61 }
 0x3fc   :  { %1122 = vmatmul.mubr.bf16.gmra.mrb[64].mxu0 %v2098_v62 }
 0x3fd   :  { %1129 = vmatprep.mubr.bf16.mxu0 %v2100_v63 }
 0x404   :  { %1130 = vmatmul.mubr.bf16.gmra.mrb[68].mxu0 %v2104_v0 }
 0x405   :  { %1137 = vmatprep.mubr.bf16.mxu0 %v2106_v1 }
 0x40c   :  { %1138 = vmatmul.mubr.bf16.gmra.mrb[72].mxu0 %v2110_v2 }
 0x40d   :  { %1145 = vmatprep.mubr.bf16.mxu0 %v2112_v3 }
 0x414   :  { %1146 = vmatmul.mubr.bf16.gmra.mrb[76].mxu0 %v2116_v4  ;;  %v1794_v4 = vld [vmem:[#allocation5 + $0x10] sm:$0xff] }
 0x415   :  { %1153 = vmatprep.mubr.bf16.mxu0 %v2118_v5 }
 0x41c   :  { %1154 = vmatmul.mubr.bf16.gmra.mrb[80].mxu0 %v2122_v8 }
 0x41d   :  { %1161 = vmatprep.mubr.bf16.mxu0 %v2124_v9 }
 0x424   :  { %1162 = vmatmul.mubr.bf16.gmra.mrb[84].mxu0 %v2128_v12  ;;  %v1795_v12 = vld [vmem:[#allocation5 + $0x18] sm:$0xff] }
 0x425   :  { %1169 = vmatprep.mubr.bf16.mxu0 %v2130_v13 }
 0x42c   :  { %1170 = vmatmul.mubr.bf16.gmra.mrb[88].mxu0 %v2134_v14 }
 0x42d   :  { %1177 = vmatprep.mubr.bf16.mxu0 %v2136_v15 }
 0x434   :  { %1178 = vmatmul.mubr.bf16.gmra.mrb[92].mxu0 %v2140_v16 }
 0x48f   :  { %v1527_v43 = vpop.f32.mrb[32].mxu0 }
 0x490   :  { %v1528_v47 = vpop.f32.mrb[33].mxu0 }
 0x491   :  { %v1529_v48 = vadd.f32 %v1528_v47, %v1527_v43  ;;  %v1530_v49 = vpop.f32.mrb[34].mxu0  ;;  %v1800_v43 = vld [vmem:[#allocation5 + $0x40] sm:$0xff] }
 0x492   :  { %v1531_v50 = vpop.f32.mrb[35].mxu0 }
 0x493   :  { %v1060_v51 = vadd.f32 %v1529_v48, %v2215_v45  ;;  %v1532_v52 = vadd.f32 %v1531_v50, %v1530_v49  ;;  %v1801_v50 = vld [vmem:[#allocation5 + $0x48] sm:$0xff] }
 0x495   :  { %v1186_v54 = vadd.f32 %v1792_v53, %v1060_v51  ;;  %v1063_v55 = vadd.f32 %v1532_v52, %v2215_v45 }
 0x497   :  { %v1218_v57 = vmax.f32 %v1186_v54, 0.0  ;;  %v1187_v59 = vadd.f32 %v1793_v58, %v1063_v55  ;;  %v1533_v60 = vpop.f32.mrb[36].mxu0 }
 0x498   :  { %v1534_v61 = vpop.f32.mrb[37].mxu0 }
 0x499   :  { %1250 = vst [vmem:[#allocation10] sm:$0xff] %v1218_v57  ;;  %v1219_v62 = vmax.f32 %v1187_v59, 0.0  ;;  %v1535_v63 = vadd.f32 %v1534_v61, %v1533_v60  ;;  %v1536_v0 = vpop.f32.mrb[38].mxu0  ;;  %v1802_v61 = vld [vmem:[#allocation5 + $0x50] sm:$0xff] }
 0x49a   :  { %v1537_v1 = vpop.f32.mrb[39].mxu0 }
 0x49b   :  { %1251 = vst [vmem:[#allocation10 + $0x8] sm:$0xff] %v1219_v62  ;;  %v1068_v2 = vadd.f32 %v1535_v63, %v2215_v45  ;;  %v1538_v3 = vadd.f32 %v1537_v1, %v1536_v0  ;;  %v1803_v1 = vld [vmem:[#allocation5 + $0x58] sm:$0xff] }
 0x49d   :  { %v1188_v5 = vadd.f32 %v1794_v4, %v1068_v2  ;;  %v1071_v8 = vadd.f32 %v1538_v3, %v2215_v45 }
 0x49f   :  { %v1220_v9 = vmax.f32 %v1188_v5, 0.0  ;;  %v1189_v13 = vadd.f32 %v1795_v12, %v1071_v8  ;;  %v1539_v14 = vpop.f32.mrb[40].mxu0 }
 0x4a0   :  { %v1540_v15 = vpop.f32.mrb[41].mxu0 }
 0x4a1   :  { %1252 = vst [vmem:[#allocation10 + $0x10] sm:$0xff] %v1220_v9  ;;  %v1221_v16 = vmax.f32 %v1189_v13, 0.0  ;;  %v1541_v11 = vadd.f32 %v1540_v15, %v1539_v14  ;;  %v1542_v18 = vpop.f32.mrb[42].mxu0  ;;  %v1804_v15 = vld [vmem:[#allocation5 + $0x60] sm:$0xff] }
 0x4a2   :  { %v1543_v22 = vpop.f32.mrb[43].mxu0 }
 0x4a3   :  { %1253 = vst [vmem:[#allocation10 + $0x18] sm:$0xff] %v1221_v16  ;;  %v1076_v24 = vadd.f32 %v1541_v11, %v2215_v45  ;;  %v1544_v56 = vadd.f32 %v1543_v22, %v1542_v18  ;;  %v1805_v22 = vld [vmem:[#allocation5 + $0x68] sm:$0xff] }
 0x4a5   :  { %v1190_v27 = vadd.f32 %v1796_v26, %v1076_v24  ;;  %v1079_v28 = vadd.f32 %v1544_v56, %v2215_v45 }
 0x4a7   :  { %v1222_v29 = vmax.f32 %v1190_v27, 0.0  ;;  %v1191_v31 = vadd.f32 %v1797_v30, %v1079_v28  ;;  %v1545_v32 = vpop.f32.mrb[44].mxu0 }
 0x4a8   :  { %v1546_v33 = vpop.f32.mrb[45].mxu0 }
 0x4a9   :  { %1254 = vst [vmem:[#allocation10 + $0x20] sm:$0xff] %v1222_v29  ;;  %v1223_v34 = vmax.f32 %v1191_v31, 0.0  ;;  %v1547_v35 = vadd.f32 %v1546_v33, %v1545_v32  ;;  %v1548_v36 = vpop.f32.mrb[46].mxu0  ;;  %v1806_v33 = vld [vmem:[#allocation5 + $0x70] sm:$0xff] }
 0x4aa   :  { %v1549_v37 = vpop.f32.mrb[47].mxu0 }
 0x4ab   :  { %1255 = vst [vmem:[#allocation10 + $0x28] sm:$0xff] %v1223_v34  ;;  %v1084_v38 = vadd.f32 %v1547_v35, %v2215_v45  ;;  %v1550_v39 = vadd.f32 %v1549_v37, %v1548_v36  ;;  %v1807_v37 = vld [vmem:[#allocation5 + $0x78] sm:$0xff] }
 0x4ad   :  { %v1192_v41 = vadd.f32 %v1798_v40, %v1084_v38  ;;  %v1087_v44 = vadd.f32 %v1550_v39, %v2215_v45 }
 0x4af   :  { %v1224_v6 = vmax.f32 %v1192_v41, 0.0  ;;  %v1193_v10 = vadd.f32 %v1799_v7, %v1087_v44  ;;  %v1551_v17 = vpop.f32.mrb[48].mxu0 }
 0x4b0   :  { %v1552_v20 = vpop.f32.mrb[49].mxu0 }
 0x4b1   :  { %1256 = vst [vmem:[#allocation10 + $0x30] sm:$0xff] %v1224_v6  ;;  %v1225_v42 = vmax.f32 %v1193_v10, 0.0  ;;  %v1553_v46 = vadd.f32 %v1552_v20, %v1551_v17  ;;  %v1554_v19 = vpop.f32.mrb[50].mxu0  ;;  %v1808_v20 = vld [vmem:[#allocation5 + $0x80] sm:$0xff] }
 0x4b2   :  { %v1555_v21 = vpop.f32.mrb[51].mxu0 }
 0x4b3   :  { %1257 = vst [vmem:[#allocation10 + $0x38] sm:$0xff] %v1225_v42  ;;  %v1092_v23 = vadd.f32 %v1553_v46, %v2215_v45  ;;  %v1556_v25 = vadd.f32 %v1555_v21, %v1554_v19  ;;  %v1809_v21 = vld [vmem:[#allocation5 + $0x88] sm:$0xff] }
 0x4b5   :  { %v1194_v47 = vadd.f32 %v1800_v43, %v1092_v23  ;;  %v1095_v48 = vadd.f32 %v1556_v25, %v2215_v45 }
 0x4b7   :  { %v1226_v49 = vmax.f32 %v1194_v47, 0.0  ;;  %v1195_v51 = vadd.f32 %v1801_v50, %v1095_v48  ;;  %v1557_v52 = vpop.f32.mrb[52].mxu0 }
 0x4b8   :  { %v1558_v53 = vpop.f32.mrb[53].mxu0 }
 0x4b9   :  { %1258 = vst [vmem:[#allocation10 + $0x40] sm:$0xff] %v1226_v49  ;;  %v1227_v54 = vmax.f32 %v1195_v51, 0.0  ;;  %v1559_v55 = vadd.f32 %v1558_v53, %v1557_v52  ;;  %v1560_v57 = vpop.f32.mrb[54].mxu0  ;;  %v1810_v53 = vld [vmem:[#allocation5 + $0x90] sm:$0xff] }
 0x4ba   :  { %v1561_v58 = vpop.f32.mrb[55].mxu0 }
 0x4bb   :  { %1259 = vst [vmem:[#allocation10 + $0x48] sm:$0xff] %v1227_v54  ;;  %v1100_v59 = vadd.f32 %v1559_v55, %v2215_v45  ;;  %v1562_v60 = vadd.f32 %v1561_v58, %v1560_v57  ;;  %v1811_v58 = vld [vmem:[#allocation5 + $0x98] sm:$0xff] }
 0x4bd   :  { %v1196_v62 = vadd.f32 %v1802_v61, %v1100_v59  ;;  %v1103_v63 = vadd.f32 %v1562_v60, %v2215_v45 }
 0x4bf   :  { %v1228_v0 = vmax.f32 %v1196_v62, 0.0  ;;  %v1197_v2 = vadd.f32 %v1803_v1, %v1103_v63  ;;  %v1563_v3 = vpop.f32.mrb[56].mxu0 }
 0x4c0   :  { %v1564_v4 = vpop.f32.mrb[57].mxu0 }
 0x4c1   :  { %1260 = vst [vmem:[#allocation10 + $0x50] sm:$0xff] %v1228_v0  ;;  %v1229_v5 = vmax.f32 %v1197_v2, 0.0  ;;  %v1565_v8 = vadd.f32 %v1564_v4, %v1563_v3  ;;  %v1566_v9 = vpop.f32.mrb[58].mxu0  ;;  %v1812_v4 = vld [vmem:[#allocation5 + $0xa0] sm:$0xff] }
 0x4c2   :  { %v1567_v12 = vpop.f32.mrb[59].mxu0 }
 0x4c3   :  { %1261 = vst [vmem:[#allocation10 + $0x58] sm:$0xff] %v1229_v5  ;;  %v1108_v13 = vadd.f32 %v1565_v8, %v2215_v45  ;;  %v1568_v14 = vadd.f32 %v1567_v12, %v1566_v9  ;;  %v1813_v12 = vld [vmem:[#allocation5 + $0xa8] sm:$0xff] }
 0x4c5   :  { %v1198_v16 = vadd.f32 %v1804_v15, %v1108_v13  ;;  %v1111_v11 = vadd.f32 %v1568_v14, %v2215_v45 }
 0x4c7   :  { %v1230_v18 = vmax.f32 %v1198_v16, 0.0  ;;  %v1199_v24 = vadd.f32 %v1805_v22, %v1111_v11  ;;  %v1569_v56 = vpop.f32.mrb[60].mxu0 }
 0x4c8   :  { %v1570_v26 = vpop.f32.mrb[61].mxu0 }
 0x4c9   :  { %1262 = vst [vmem:[#allocation10 + $0x60] sm:$0xff] %v1230_v18  ;;  %v1231_v27 = vmax.f32 %v1199_v24, 0.0  ;;  %v1571_v28 = vadd.f32 %v1570_v26, %v1569_v56  ;;  %v1572_v29 = vpop.f32.mrb[62].mxu0  ;;  %v1814_v26 = vld [vmem:[#allocation5 + $0xb0] sm:$0xff] }
 0x4ca   :  { %v1573_v30 = vpop.f32.mrb[63].mxu0 }
 0x4cb   :  { %1263 = vst [vmem:[#allocation10 + $0x68] sm:$0xff] %v1231_v27  ;;  %v1116_v31 = vadd.f32 %v1571_v28, %v2215_v45  ;;  %v1574_v32 = vadd.f32 %v1573_v30, %v1572_v29  ;;  %v1815_v30 = vld [vmem:[#allocation5 + $0xb8] sm:$0xff] }
 0x4cd   :  { %v1200_v34 = vadd.f32 %v1806_v33, %v1116_v31  ;;  %v1119_v35 = vadd.f32 %v1574_v32, %v2215_v45 }
 0x4cf   :  { %v1232_v36 = vmax.f32 %v1200_v34, 0.0  ;;  %v1201_v38 = vadd.f32 %v1807_v37, %v1119_v35  ;;  %v1575_v39 = vpop.f32.mrb[64].mxu0 }
 0x4d0   :  { %v1576_v40 = vpop.f32.mrb[65].mxu0 }
 0x4d1   :  { %1264 = vst [vmem:[#allocation10 + $0x70] sm:$0xff] %v1232_v36  ;;  %v1233_v41 = vmax.f32 %v1201_v38, 0.0  ;;  %v1577_v44 = vadd.f32 %v1576_v40, %v1575_v39  ;;  %v1578_v6 = vpop.f32.mrb[66].mxu0  ;;  %v1816_v40 = vld [vmem:[#allocation5 + $0xc0] sm:$0xff] }
 0x4d2   :  { %v1579_v7 = vpop.f32.mrb[67].mxu0 }
 0x4d3   :  { %1265 = vst [vmem:[#allocation10 + $0x78] sm:$0xff] %v1233_v41  ;;  %v1124_v10 = vadd.f32 %v1577_v44, %v2215_v45  ;;  %v1580_v17 = vadd.f32 %v1579_v7, %v1578_v6  ;;  %v1817_v7 = vld [vmem:[#allocation5 + $0xc8] sm:$0xff] }
 0x4d5   :  { %v1202_v42 = vadd.f32 %v1808_v20, %v1124_v10  ;;  %v1127_v46 = vadd.f32 %v1580_v17, %v2215_v45 }
 0x4d7   :  { %v1234_v19 = vmax.f32 %v1202_v42, 0.0  ;;  %v1203_v23 = vadd.f32 %v1809_v21, %v1127_v46  ;;  %v1581_v25 = vpop.f32.mrb[68].mxu0 }
 0x4d8   :  { %v1582_v43 = vpop.f32.mrb[69].mxu0 }
 0x4d9   :  { %1266 = vst [vmem:[#allocation10 + $0x80] sm:$0xff] %v1234_v19  ;;  %v1235_v47 = vmax.f32 %v1203_v23, 0.0  ;;  %v1583_v48 = vadd.f32 %v1582_v43, %v1581_v25  ;;  %v1584_v49 = vpop.f32.mrb[70].mxu0  ;;  %v1818_v43 = vld [vmem:[#allocation5 + $0xd0] sm:$0xff] }
 0x4da   :  { %v1585_v50 = vpop.f32.mrb[71].mxu0 }
 0x4db   :  { %1267 = vst [vmem:[#allocation10 + $0x88] sm:$0xff] %v1235_v47  ;;  %v1132_v51 = vadd.f32 %v1583_v48, %v2215_v45  ;;  %v1586_v52 = vadd.f32 %v1585_v50, %v1584_v49  ;;  %v1819_v50 = vld [vmem:[#allocation5 + $0xd8] sm:$0xff] }
 0x4dd   :  { %v1204_v54 = vadd.f32 %v1810_v53, %v1132_v51  ;;  %v1135_v55 = vadd.f32 %v1586_v52, %v2215_v45 }
 0x4df   :  { %v1236_v57 = vmax.f32 %v1204_v54, 0.0  ;;  %v1205_v59 = vadd.f32 %v1811_v58, %v1135_v55  ;;  %v1587_v60 = vpop.f32.mrb[72].mxu0 }
 0x4e0   :  { %v1588_v61 = vpop.f32.mrb[73].mxu0 }
 0x4e1   :  { %1268 = vst [vmem:[#allocation10 + $0x90] sm:$0xff] %v1236_v57  ;;  %v1237_v62 = vmax.f32 %v1205_v59, 0.0  ;;  %v1589_v63 = vadd.f32 %v1588_v61, %v1587_v60  ;;  %v1590_v0 = vpop.f32.mrb[74].mxu0  ;;  %v1820_v61 = vld [vmem:[#allocation5 + $0xe0] sm:$0xff] }
 0x4e2   :  { %v1591_v1 = vpop.f32.mrb[75].mxu0 }
 0x4e3   :  { %1269 = vst [vmem:[#allocation10 + $0x98] sm:$0xff] %v1237_v62  ;;  %v1140_v2 = vadd.f32 %v1589_v63, %v2215_v45  ;;  %v1592_v3 = vadd.f32 %v1591_v1, %v1590_v0  ;;  %v1821_v1 = vld [vmem:[#allocation5 + $0xe8] sm:$0xff] }
 0x4e5   :  { %v1206_v5 = vadd.f32 %v1812_v4, %v1140_v2  ;;  %v1143_v8 = vadd.f32 %v1592_v3, %v2215_v45 }
 0x4e7   :  { %v1238_v9 = vmax.f32 %v1206_v5, 0.0  ;;  %v1207_v13 = vadd.f32 %v1813_v12, %v1143_v8  ;;  %v1593_v14 = vpop.f32.mrb[76].mxu0 }
 0x4e8   :  { %v1594_v15 = vpop.f32.mrb[77].mxu0 }
 0x4e9   :  { %1270 = vst [vmem:[#allocation10 + $0xa0] sm:$0xff] %v1238_v9  ;;  %v1239_v16 = vmax.f32 %v1207_v13, 0.0  ;;  %v1595_v11 = vadd.f32 %v1594_v15, %v1593_v14  ;;  %v1596_v18 = vpop.f32.mrb[78].mxu0  ;;  %v1822_v15 = vld [vmem:[#allocation5 + $0xf0] sm:$0xff] }
 0x4ea   :  { %v1597_v22 = vpop.f32.mrb[79].mxu0 }
 0x4eb   :  { %1271 = vst [vmem:[#allocation10 + $0xa8] sm:$0xff] %v1239_v16  ;;  %v1148_v24 = vadd.f32 %v1595_v11, %v2215_v45  ;;  %v1598_v56 = vadd.f32 %v1597_v22, %v1596_v18  ;;  %v1823_v22 = vld [vmem:[#allocation5 + $0xf8] sm:$0xff] }
 0x4ed   :  { %v1208_v27 = vadd.f32 %v1814_v26, %v1148_v24  ;;  %v1151_v28 = vadd.f32 %v1598_v56, %v2215_v45 }
 0x4ef   :  { %v1240_v29 = vmax.f32 %v1208_v27, 0.0  ;;  %v1209_v31 = vadd.f32 %v1815_v30, %v1151_v28  ;;  %v1599_v32 = vpop.f32.mrb[80].mxu0 }
 0x4f0   :  { %v1600_v33 = vpop.f32.mrb[81].mxu0 }
 0x4f1   :  { %1272 = vst [vmem:[#allocation10 + $0xb0] sm:$0xff] %v1240_v29  ;;  %v1241_v34 = vmax.f32 %v1209_v31, 0.0  ;;  %v1601_v35 = vadd.f32 %v1600_v33, %v1599_v32  ;;  %v1602_v36 = vpop.f32.mrb[82].mxu0 }
 0x4f2   :  { %v1603_v37 = vpop.f32.mrb[83].mxu0 }
 0x4f3   :  { %1273 = vst [vmem:[#allocation10 + $0xb8] sm:$0xff] %v1241_v34  ;;  %v1156_v38 = vadd.f32 %v1601_v35, %v2215_v45  ;;  %v1604_v39 = vadd.f32 %v1603_v37, %v1602_v36 }
 0x4f5   :  { %v1210_v41 = vadd.f32 %v1816_v40, %v1156_v38  ;;  %v1159_v44 = vadd.f32 %v1604_v39, %v2215_v45 }
 0x4f7   :  { %v1242_v6 = vmax.f32 %v1210_v41, 0.0  ;;  %v1211_v10 = vadd.f32 %v1817_v7, %v1159_v44  ;;  %v1605_v17 = vpop.f32.mrb[84].mxu0 }
 0x4f8   :  { %v1606_v20 = vpop.f32.mrb[85].mxu0 }
 0x4f9   :  { %1274 = vst [vmem:[#allocation10 + $0xc0] sm:$0xff] %v1242_v6  ;;  %v1243_v42 = vmax.f32 %v1211_v10, 0.0  ;;  %v1607_v46 = vadd.f32 %v1606_v20, %v1605_v17  ;;  %v1608_v19 = vpop.f32.mrb[86].mxu0 }
 0x4fa   :  { %v1609_v21 = vpop.f32.mrb[87].mxu0 }
 0x4fb   :  { %1275 = vst [vmem:[#allocation10 + $0xc8] sm:$0xff] %v1243_v42  ;;  %v1164_v23 = vadd.f32 %v1607_v46, %v2215_v45  ;;  %v1610_v25 = vadd.f32 %v1609_v21, %v1608_v19 }
 0x4fd   :  { %v1212_v47 = vadd.f32 %v1818_v43, %v1164_v23  ;;  %v1167_v48 = vadd.f32 %v1610_v25, %v2215_v45 }
 0x4ff   :  { %v1244_v49 = vmax.f32 %v1212_v47, 0.0  ;;  %v1213_v51 = vadd.f32 %v1819_v50, %v1167_v48  ;;  %v1611_v52 = vpop.f32.mrb[88].mxu0 }
 0x500   :  { %v1612_v53 = vpop.f32.mrb[89].mxu0 }
 0x501   :  { %1276 = vst [vmem:[#allocation10 + $0xd0] sm:$0xff] %v1244_v49  ;;  %v1245_v54 = vmax.f32 %v1213_v51, 0.0  ;;  %v1613_v55 = vadd.f32 %v1612_v53, %v1611_v52  ;;  %v1614_v57 = vpop.f32.mrb[90].mxu0 }
 0x502   :  { %v1615_v58 = vpop.f32.mrb[91].mxu0 }
 0x503   :  { %1277 = vst [vmem:[#allocation10 + $0xd8] sm:$0xff] %v1245_v54  ;;  %v1172_v59 = vadd.f32 %v1613_v55, %v2215_v45  ;;  %v1616_v60 = vadd.f32 %v1615_v58, %v1614_v57 }
 0x505   :  { %v1214_v62 = vadd.f32 %v1820_v61, %v1172_v59  ;;  %v1175_v63 = vadd.f32 %v1616_v60, %v2215_v45 }
 0x507   :  { %v1246_v0 = vmax.f32 %v1214_v62, 0.0  ;;  %v1215_v2 = vadd.f32 %v1821_v1, %v1175_v63  ;;  %v1617_v3 = vpop.f32.mrb[92].mxu0 }
 0x508   :  { %v1618_v4 = vpop.f32.mrb[93].mxu0 }
 0x509   :  { %1278 = vst [vmem:[#allocation10 + $0xe0] sm:$0xff] %v1246_v0  ;;  %v1247_v5 = vmax.f32 %v1215_v2, 0.0  ;;  %v1619_v8 = vadd.f32 %v1618_v4, %v1617_v3  ;;  %v1620_v9 = vpop.f32.mrb[94].mxu0 }
 0x50a   :  { %v1621_v12 = vpop.f32.mrb[95].mxu0 }
 0x50b   :  { %1279 = vst [vmem:[#allocation10 + $0xe8] sm:$0xff] %v1247_v5  ;;  %v1180_v13 = vadd.f32 %v1619_v8, %v2215_v45  ;;  %v1622_v14 = vadd.f32 %v1621_v12, %v1620_v9 }
 0x50d   :  { %v1216_v16 = vadd.f32 %v1822_v15, %v1180_v13  ;;  %v1183_v11 = vadd.f32 %v1622_v14, %v2215_v45 }
 0x50f   :  { %v1248_v18 = vmax.f32 %v1216_v16, 0.0  ;;  %v1217_v24 = vadd.f32 %v1823_v22, %v1183_v11 }
 0x511   :  { %1280 = vst [vmem:[#allocation10 + $0xf0] sm:$0xff] %v1248_v18  ;;  %v1249_v56 = vmax.f32 %v1217_v24, 0.0 }
 0x513   :  { %1281 = vst [vmem:[#allocation10 + $0xf8] sm:$0xff] %v1249_v56 }
 0x514   :  { %1923 = shalt.err (!%p1920_p8)
}
 0x515   :  { %s1924_s30 = scalar_lea.hbm %s2270_s6, 4096 }
 0x516   :  { %p1925_p9 = scmp.ne.s32.totalorder %s2270_s6, %s1924_s30  ;;  %p1928_p10 = scmp.lt.u32.totalorder %s1924_s30, %s2270_s6 }
 0x518   :  { %p1930_p11 = pnand %p1928_p10, %p1925_p9 }
 0x51a   :  { %1933 = shalt.err (!%p1930_p11)
}
 0x51b   :  { %1293 = dma.vmem_to_hbm [thread:$0]  %s1288_s26, 4096, %s2270_s6, [#allocation4], %s1944_s9, %s1944_s9, %s1945_s10  }
 0x51c   :  { %1940 = dma.done.wait [#allocation4], 4096  }
 0x51d   :  { %1941 = vsyncadd [#allocation4], 4294963200 }
 0x51e   :  { %1297 = vsyncpa [#allocation3], 1 }
 0x51f   :  { %1298 = vsyncpa [#allocation6], 1 }
 0x520   :  { %1299 = vsyncpa [#allocation9], 1 }
 0x521   :  { %1300 = vsyncpa [#allocation4], 1 }

</bundles_post_ra>
